<compile_context>
chip_gen: v7x
topology: tpu7x:2x2x1
jax: 0.10.0
libtpu: 0.0.40
codegen_flags: <defaults>
</compile_context>

<pallas_src>
import functools

import numpy as np
import jax
import jax.numpy as jnp
from jax.experimental import pallas as pl
from jax.experimental.pallas import tpu as pltpu


def realnvp_kernel(x_ref, w1_ref, b1_ref, w2_ref, b2_ref, w3_ref, b3_ref,
                   out_ref, *, n_blocks, n_layers, half, perms):
    """RealNVP forward on one feature-major batch tile.

    Shapes (f32), L = n_blocks * n_layers coupling layers, H = half, D = 2H:
      x_ref  : (D, TILE_N)            batch on lanes (lane-dense)
      w1_ref : (L, H, H)   b1_ref : (L, H, 1)     (out, in) PyTorch layout
      w2_ref : (L, H, H)   b2_ref : (L, H, 1)
      w3_ref : (L, D, H)   b3_ref : (L, D, 1)     fused scale|translate rows
      out_ref: (D, TILE_N)
      perms  : static tuple of channel permutations between blocks.
    """
    H = half
    f32 = jnp.float32

    def linear(w, b, x):
        # w: (h_out, h_in), b: (h_out, 1), x: (h_in, T) -> (h_out, T)
        h_in = w.shape[1]
        if h_in >= 128:
            # Contraction wide enough to be worth the MXU.
            return jnp.dot(w, x, preferred_element_type=f32) + b
        # Small H: unrolled broadcast-FMAs on the VPU, exact f32 accumulation.
        acc = w[:, 0:1] * x[0:1, :]
        for j in range(1, h_in):
            acc = acc + w[:, j:j + 1] * x[j:j + 1, :]
        return acc + b

    def permute(a0, a1, p):
        # Static channel permutation (model buffer) -> compile-time row gather.
        # TODO(synk): for H >= 128 replace with P-submatrix matmuls folded into w1.
        def row(k):
            return a0[k:k + 1, :] if k < H else a1[k - H:k - H + 1, :]
        new0 = jnp.concatenate([row(p[k]) for k in range(H)], axis=0)
        new1 = jnp.concatenate([row(p[k]) for k in range(H, 2 * H)], axis=0)
        return new0, new1

    # Split once; carried as two (H, TILE_N) lane-dense values from here on.
    x0 = x_ref[:H, :]
    x1 = x_ref[H:, :]

    layer = 0
    for blk in range(n_blocks):
        if blk > 0:
            x0, x1 = permute(x0, x1, perms[blk - 1])
        for _ in range(n_layers):
            # Coupling MLP: H -> H -> H -> 2H, ReLU between, last output = [s|t].
            h = jnp.maximum(linear(w1_ref[layer], b1_ref[layer], x0), 0.0)
            h = jnp.maximum(linear(w2_ref[layer], b2_ref[layer], h), 0.0)
            st = linear(w3_ref[layer], b3_ref[layer], h)          # (2H, T)
            s = 0.1 * jnp.tanh(st[:H, :])
            t = st[H:, :]
            # y = cat([x1 * exp(s) + t, x0]) -> swap of the carried halves.
            x0, x1 = x1 * jnp.exp(s) + t, x0
            layer += 1

    # Two direct slice stores (no concatenate / extra VMEM copy).
    out_ref[:H, :] = x0
    out_ref[H:, :] = x1


def _pick_tile_n(n_rows, requested):
    """Lane-aligned batch tile; keep >= 2 grid steps when possible (v7x)."""
    if n_rows <= 128:
        return n_rows
    t = min(requested, n_rows)
    if n_rows >= 256:
        t = min(t, -(-n_rows // 2))        # at least 2 grid steps
    return max(128, (t // 128) * 128)      # multiple of 128 lanes


def _padded_vmem_bytes(a):
    s = a.shape
    lead = 1
    for d in s[:-2]:
        lead *= d
    sub = -(-s[-2] // 8) * 8
    lane = -(-s[-1] // 128) * 128
    return lead * sub * lane * a.dtype.itemsize


def realnvp_forward(x, params, *, perms, n_blocks, n_layers, tile_n=1024):
    w1, b1, w2, b2, w3, b3 = params
    N, D = x.shape
    assert D % 2 == 0 and D == w3.shape[1]
    H = D // 2
    L = n_blocks * n_layers
    tile_n = _pick_tile_n(N, tile_n)

    # Feature-major (D, N): batch on the lane axis (layout plumbing only).
    x_t = jnp.transpose(x)

    kernel = functools.partial(realnvp_kernel, n_blocks=n_blocks,
                               n_layers=n_layers, half=H, perms=perms)

    def resident(a):
        nd = a.ndim
        return pl.BlockSpec(a.shape, lambda i, _n=nd: (0,) * _n)

    grid = (pl.cdiv(N, tile_n),)

    weight_bytes = sum(int(a.size) * 4 for a in params)
    cost = pl.CostEstimate(
        flops=int(2 * N * L * 4 * H * H),
        transcendentals=int(2 * N * L * H),
        bytes_accessed=int(2 * N * D * 4 + weight_bytes))

    # Explicit VMEM budget: 2x double-buffered activation tiles + resident
    # weights (double-buffered by the pipeline) + slack; clamped for v7x 64MiB.
    vmem_est = (4 * D * tile_n * 4
                + 2 * sum(_padded_vmem_bytes(a) for a in params)
                + (2 << 20))
    vmem_limit = int(min(max(vmem_est, 32 << 20), 56 << 20))

    out_t = pl.pallas_call(
        kernel,
        out_shape=jax.ShapeDtypeStruct((D, N), x.dtype),
        grid=grid,
        in_specs=[
            pl.BlockSpec((D, tile_n), lambda i: (0, i)),   # batch-tiled activations
            resident(w1), resident(b1),
            resident(w2), resident(b2),
            resident(w3), resident(b3),
        ],
        out_specs=pl.BlockSpec((D, tile_n), lambda i: (0, i)),
        input_output_aliases={0: 0},                       # reuse x_t's HBM buffer
        cost_estimate=cost,
        compiler_params=pltpu.CompilerParams(
            dimension_semantics=("parallel",),             # v7x: shard batch on 2 TCs
            vmem_limit_bytes=vmem_limit),
    )(x_t, w1, b1, w2, b2, w3, b3)

    return jnp.transpose(out_t)


def init_params(key, in_channels, n_blocks, n_layers, perm_seed=0):
    """nn.Linear-style U(-1/sqrt(fan_in), +1/sqrt(fan_in)) init.

    Weights kept in PyTorch (out, in) layout; the last Linear of each coupling
    MLP is the fused (2H, H) scale|translate matrix; biases are (.., 1) column
    vectors for lane broadcast.  Permutations are fixed buffers -> static ints.
    """
    D = in_channels
    H = D // 2
    L = n_blocks * n_layers

    def uniform(k, shape, fan_in):
        b = 1.0 / float(np.sqrt(fan_in))
        return jax.random.uniform(k, shape, jnp.float32, -b, b)

    ks = jax.random.split(key, 6)
    w1 = uniform(ks[0], (L, H, H), H)
    b1 = uniform(ks[1], (L, H, 1), H)
    w2 = uniform(ks[2], (L, H, H), H)
    b2 = uniform(ks[3], (L, H, 1), H)
    w3 = uniform(ks[4], (L, D, H), H)
    b3 = uniform(ks[5], (L, D, 1), H)

    rng = np.random.default_rng(perm_seed)
    perms = tuple(tuple(int(v) for v in rng.permutation(D))
                  for _ in range(max(n_blocks - 1, 0)))
    return (w1, b1, w2, b2, w3, b3), perms


def realnvp_reference(x, params, perms, *, n_blocks, n_layers):
    """Pure-JAX reference mirroring the PyTorch module semantics."""
    w1, b1, w2, b2, w3, b3 = params
    D = x.shape[-1]
    H = D // 2
    hp = jax.lax.Precision.HIGHEST
    layer = 0
    for blk in range(n_blocks):
        if blk > 0:
            x = x[:, list(perms[blk - 1])]
        for _ in range(n_layers):
            x0, x1 = x[:, :H], x[:, H:]
            h = jnp.maximum(jnp.dot(x0, w1[layer].T, precision=hp) + b1[layer, :, 0], 0.0)
            h = jnp.maximum(jnp.dot(h, w2[layer].T, precision=hp) + b2[layer, :, 0], 0.0)
            st = jnp.dot(h, w3[layer].T, precision=hp) + b3[layer, :, 0]
            s = 0.1 * jnp.tanh(st[:, :H])
            t = st[:, H:]
            x = jnp.concatenate([x1 * jnp.exp(s) + t, x0], axis=-1)
            layer += 1
    return x


if __name__ == "__main__":
    # Module-consistent small sizes: in_channels=8 (even), 2 blocks,
    # 2 coupling layers / block (PyTorch defaults); batch big enough that the
    # grid has 2 steps (tile_n=512) so v7x megacore sharding is exercised.
    N, D = 1024, 8
    n_blocks, n_layers = 2, 2

    key = jax.random.PRNGKey(0)
    kx, kp = jax.random.split(key)
    x = jax.random.normal(kx, (N, D), dtype=jnp.float32)
    params, perms = init_params(kp, D, n_blocks, n_layers)

    fwd = jax.jit(functools.partial(
        realnvp_forward, perms=perms, n_blocks=n_blocks, n_layers=n_layers,
        tile_n=512))
    y = jax.block_until_ready(fwd(x, params))

    y_ref = realnvp_reference(x, params, perms, n_blocks=n_blocks,
                              n_layers=n_layers)

    assert y.shape == (N, D)
    err = float(jnp.max(jnp.abs(y - y_ref)))
    assert jnp.allclose(y, y_ref, atol=1e-5, rtol=1e-5), f"mismatch, max|d|={err}"

    print("KERNEL_OK")
</pallas_src>

<mosaic_0001>
module attributes {stable_mosaic.version = 11 : i64} {
  func.func @realnvp_kernel(%arg0: i32, %arg1: memref<8x512xf32, #tpu.memory_space<vmem>>, %arg2: memref<4x4x4xf32, #tpu.memory_space<vmem>>, %arg3: memref<4x4x1xf32, #tpu.memory_space<vmem>>, %arg4: memref<4x4x4xf32, #tpu.memory_space<vmem>>, %arg5: memref<4x4x1xf32, #tpu.memory_space<vmem>>, %arg6: memref<4x8x4xf32, #tpu.memory_space<vmem>>, %arg7: memref<4x8x1xf32, #tpu.memory_space<vmem>>, %arg8: memref<8x512xf32, #tpu.memory_space<vmem>>) attributes {dimension_semantics = [#tpu.dimension_semantics<parallel>], iteration_bounds = array<i64: 2>, scalar_prefetch = 0 : i64, scratch_operands = 0 : i64, tpu.core_type = #tpu.core_type<tc>, window_params = [{transform_indices = @transform_0, window_bounds = array<i64: 8, 512>}, {pipeline_mode = #tpu.pipeline_mode<synchronous>, transform_indices = @transform_1, window_bounds = array<i64: 4, 4, 4>}, {pipeline_mode = #tpu.pipeline_mode<synchronous>, transform_indices = @transform_2, window_bounds = array<i64: 4, 4, 1>}, {pipeline_mode = #tpu.pipeline_mode<synchronous>, transform_indices = @transform_3, window_bounds = array<i64: 4, 4, 4>}, {pipeline_mode = #tpu.pipeline_mode<synchronous>, transform_indices = @transform_4, window_bounds = array<i64: 4, 4, 1>}, {pipeline_mode = #tpu.pipeline_mode<synchronous>, transform_indices = @transform_5, window_bounds = array<i64: 4, 8, 4>}, {pipeline_mode = #tpu.pipeline_mode<synchronous>, transform_indices = @transform_6, window_bounds = array<i64: 4, 8, 1>}, {transform_indices = @transform_7, window_bounds = array<i64: 8, 512>}]} {
    %c0 = arith.constant 0 : index
    %c0_0 = arith.constant 0 : index
    %0 = vector.load %arg1[%c0, %c0_0] : memref<8x512xf32, #tpu.memory_space<vmem>>, vector<4x512xf32>
    %c4 = arith.constant 4 : index
    %c0_1 = arith.constant 0 : index
    %1 = vector.load %arg1[%c4, %c0_1] : memref<8x512xf32, #tpu.memory_space<vmem>>, vector<4x512xf32>
    %c0_2 = arith.constant 0 : index
    %c0_3 = arith.constant 0 : index
    %c0_4 = arith.constant 0 : index
    %2 = vector.load %arg2[%c0_2, %c0_3, %c0_4] : memref<4x4x4xf32, #tpu.memory_space<vmem>>, vector<1x4x4xf32>
    %3 = vector.shape_cast %2 : vector<1x4x4xf32> to vector<4x4xf32>
    %c0_5 = arith.constant 0 : index
    %c0_6 = arith.constant 0 : index
    %c0_7 = arith.constant 0 : index
    %4 = vector.load %arg3[%c0_5, %c0_6, %c0_7] : memref<4x4x1xf32, #tpu.memory_space<vmem>>, vector<1x4x1xf32>
    %5 = vector.shape_cast %4 : vector<1x4x1xf32> to vector<4x1xf32>
    %6 = vector.extract_strided_slice %3 {offsets = [0, 0], sizes = [4, 1], strides = [1, 1]} : vector<4x4xf32> to vector<4x1xf32>
    %7 = vector.extract_strided_slice %0 {offsets = [0, 0], sizes = [1, 512], strides = [1, 1]} : vector<4x512xf32> to vector<1x512xf32>
    %8 = vector.broadcast %6 : vector<4x1xf32> to vector<4x512xf32>
    %9 = vector.broadcast %7 : vector<1x512xf32> to vector<4x512xf32>
    %10 = arith.mulf %8, %9 : vector<4x512xf32>
    %11 = vector.extract_strided_slice %3 {offsets = [0, 1], sizes = [4, 1], strides = [1, 1]} : vector<4x4xf32> to vector<4x1xf32>
    %12 = vector.extract_strided_slice %0 {offsets = [1, 0], sizes = [1, 512], strides = [1, 1]} : vector<4x512xf32> to vector<1x512xf32>
    %13 = vector.broadcast %11 : vector<4x1xf32> to vector<4x512xf32>
    %14 = vector.broadcast %12 : vector<1x512xf32> to vector<4x512xf32>
    %15 = arith.mulf %13, %14 : vector<4x512xf32>
    %16 = arith.addf %10, %15 : vector<4x512xf32>
    %17 = vector.extract_strided_slice %3 {offsets = [0, 2], sizes = [4, 1], strides = [1, 1]} : vector<4x4xf32> to vector<4x1xf32>
    %18 = vector.extract_strided_slice %0 {offsets = [2, 0], sizes = [1, 512], strides = [1, 1]} : vector<4x512xf32> to vector<1x512xf32>
    %19 = vector.broadcast %17 : vector<4x1xf32> to vector<4x512xf32>
    %20 = vector.broadcast %18 : vector<1x512xf32> to vector<4x512xf32>
    %21 = arith.mulf %19, %20 : vector<4x512xf32>
    %22 = arith.addf %16, %21 : vector<4x512xf32>
    %23 = vector.extract_strided_slice %3 {offsets = [0, 3], sizes = [4, 1], strides = [1, 1]} : vector<4x4xf32> to vector<4x1xf32>
    %24 = vector.extract_strided_slice %0 {offsets = [3, 0], sizes = [1, 512], strides = [1, 1]} : vector<4x512xf32> to vector<1x512xf32>
    %25 = vector.broadcast %23 : vector<4x1xf32> to vector<4x512xf32>
    %26 = vector.broadcast %24 : vector<1x512xf32> to vector<4x512xf32>
    %27 = arith.mulf %25, %26 : vector<4x512xf32>
    %28 = arith.addf %22, %27 : vector<4x512xf32>
    %29 = vector.broadcast %5 : vector<4x1xf32> to vector<4x512xf32>
    %30 = arith.addf %28, %29 : vector<4x512xf32>
    %cst = arith.constant 0.000000e+00 : f32
    %31 = vector.broadcast %cst : f32 to vector<4x512xf32>
    %32 = arith.maximumf %30, %31 : vector<4x512xf32>
    %c0_8 = arith.constant 0 : index
    %c0_9 = arith.constant 0 : index
    %c0_10 = arith.constant 0 : index
    %33 = vector.load %arg4[%c0_8, %c0_9, %c0_10] : memref<4x4x4xf32, #tpu.memory_space<vmem>>, vector<1x4x4xf32>
    %34 = vector.shape_cast %33 : vector<1x4x4xf32> to vector<4x4xf32>
    %c0_11 = arith.constant 0 : index
    %c0_12 = arith.constant 0 : index
    %c0_13 = arith.constant 0 : index
    %35 = vector.load %arg5[%c0_11, %c0_12, %c0_13] : memref<4x4x1xf32, #tpu.memory_space<vmem>>, vector<1x4x1xf32>
    %36 = vector.shape_cast %35 : vector<1x4x1xf32> to vector<4x1xf32>
    %37 = vector.extract_strided_slice %34 {offsets = [0, 0], sizes = [4, 1], strides = [1, 1]} : vector<4x4xf32> to vector<4x1xf32>
    %38 = vector.extract_strided_slice %32 {offsets = [0, 0], sizes = [1, 512], strides = [1, 1]} : vector<4x512xf32> to vector<1x512xf32>
    %39 = vector.broadcast %37 : vector<4x1xf32> to vector<4x512xf32>
    %40 = vector.broadcast %38 : vector<1x512xf32> to vector<4x512xf32>
    %41 = arith.mulf %39, %40 : vector<4x512xf32>
    %42 = vector.extract_strided_slice %34 {offsets = [0, 1], sizes = [4, 1], strides = [1, 1]} : vector<4x4xf32> to vector<4x1xf32>
    %43 = vector.extract_strided_slice %32 {offsets = [1, 0], sizes = [1, 512], strides = [1, 1]} : vector<4x512xf32> to vector<1x512xf32>
    %44 = vector.broadcast %42 : vector<4x1xf32> to vector<4x512xf32>
    %45 = vector.broadcast %43 : vector<1x512xf32> to vector<4x512xf32>
    %46 = arith.mulf %44, %45 : vector<4x512xf32>
    %47 = arith.addf %41, %46 : vector<4x512xf32>
    %48 = vector.extract_strided_slice %34 {offsets = [0, 2], sizes = [4, 1], strides = [1, 1]} : vector<4x4xf32> to vector<4x1xf32>
    %49 = vector.extract_strided_slice %32 {offsets = [2, 0], sizes = [1, 512], strides = [1, 1]} : vector<4x512xf32> to vector<1x512xf32>
    %50 = vector.broadcast %48 : vector<4x1xf32> to vector<4x512xf32>
    %51 = vector.broadcast %49 : vector<1x512xf32> to vector<4x512xf32>
    %52 = arith.mulf %50, %51 : vector<4x512xf32>
    %53 = arith.addf %47, %52 : vector<4x512xf32>
    %54 = vector.extract_strided_slice %34 {offsets = [0, 3], sizes = [4, 1], strides = [1, 1]} : vector<4x4xf32> to vector<4x1xf32>
    %55 = vector.extract_strided_slice %32 {offsets = [3, 0], sizes = [1, 512], strides = [1, 1]} : vector<4x512xf32> to vector<1x512xf32>
    %56 = vector.broadcast %54 : vector<4x1xf32> to vector<4x512xf32>
    %57 = vector.broadcast %55 : vector<1x512xf32> to vector<4x512xf32>
    %58 = arith.mulf %56, %57 : vector<4x512xf32>
    %59 = arith.addf %53, %58 : vector<4x512xf32>
    %60 = vector.broadcast %36 : vector<4x1xf32> to vector<4x512xf32>
    %61 = arith.addf %59, %60 : vector<4x512xf32>
    %cst_14 = arith.constant 0.000000e+00 : f32
    %62 = vector.broadcast %cst_14 : f32 to vector<4x512xf32>
    %63 = arith.maximumf %61, %62 : vector<4x512xf32>
    %c0_15 = arith.constant 0 : index
    %c0_16 = arith.constant 0 : index
    %c0_17 = arith.constant 0 : index
    %64 = vector.load %arg6[%c0_15, %c0_16, %c0_17] : memref<4x8x4xf32, #tpu.memory_space<vmem>>, vector<1x8x4xf32>
    %65 = vector.shape_cast %64 : vector<1x8x4xf32> to vector<8x4xf32>
    %c0_18 = arith.constant 0 : index
    %c0_19 = arith.constant 0 : index
    %c0_20 = arith.constant 0 : index
    %66 = vector.load %arg7[%c0_18, %c0_19, %c0_20] : memref<4x8x1xf32, #tpu.memory_space<vmem>>, vector<1x8x1xf32>
    %67 = vector.shape_cast %66 : vector<1x8x1xf32> to vector<8x1xf32>
    %68 = vector.extract_strided_slice %65 {offsets = [0, 0], sizes = [8, 1], strides = [1, 1]} : vector<8x4xf32> to vector<8x1xf32>
    %69 = vector.extract_strided_slice %63 {offsets = [0, 0], sizes = [1, 512], strides = [1, 1]} : vector<4x512xf32> to vector<1x512xf32>
    %70 = vector.broadcast %68 : vector<8x1xf32> to vector<8x512xf32>
    %71 = vector.broadcast %69 : vector<1x512xf32> to vector<8x512xf32>
    %72 = arith.mulf %70, %71 : vector<8x512xf32>
    %73 = vector.extract_strided_slice %65 {offsets = [0, 1], sizes = [8, 1], strides = [1, 1]} : vector<8x4xf32> to vector<8x1xf32>
    %74 = vector.extract_strided_slice %63 {offsets = [1, 0], sizes = [1, 512], strides = [1, 1]} : vector<4x512xf32> to vector<1x512xf32>
    %75 = vector.broadcast %73 : vector<8x1xf32> to vector<8x512xf32>
    %76 = vector.broadcast %74 : vector<1x512xf32> to vector<8x512xf32>
    %77 = arith.mulf %75, %76 : vector<8x512xf32>
    %78 = arith.addf %72, %77 : vector<8x512xf32>
    %79 = vector.extract_strided_slice %65 {offsets = [0, 2], sizes = [8, 1], strides = [1, 1]} : vector<8x4xf32> to vector<8x1xf32>
    %80 = vector.extract_strided_slice %63 {offsets = [2, 0], sizes = [1, 512], strides = [1, 1]} : vector<4x512xf32> to vector<1x512xf32>
    %81 = vector.broadcast %79 : vector<8x1xf32> to vector<8x512xf32>
    %82 = vector.broadcast %80 : vector<1x512xf32> to vector<8x512xf32>
    %83 = arith.mulf %81, %82 : vector<8x512xf32>
    %84 = arith.addf %78, %83 : vector<8x512xf32>
    %85 = vector.extract_strided_slice %65 {offsets = [0, 3], sizes = [8, 1], strides = [1, 1]} : vector<8x4xf32> to vector<8x1xf32>
    %86 = vector.extract_strided_slice %63 {offsets = [3, 0], sizes = [1, 512], strides = [1, 1]} : vector<4x512xf32> to vector<1x512xf32>
    %87 = vector.broadcast %85 : vector<8x1xf32> to vector<8x512xf32>
    %88 = vector.broadcast %86 : vector<1x512xf32> to vector<8x512xf32>
    %89 = arith.mulf %87, %88 : vector<8x512xf32>
    %90 = arith.addf %84, %89 : vector<8x512xf32>
    %91 = vector.broadcast %67 : vector<8x1xf32> to vector<8x512xf32>
    %92 = arith.addf %90, %91 : vector<8x512xf32>
    %93 = vector.extract_strided_slice %92 {offsets = [0, 0], sizes = [4, 512], strides = [1, 1]} : vector<8x512xf32> to vector<4x512xf32>
    %94 = math.tanh %93 : vector<4x512xf32>
    %cst_21 = arith.constant 1.000000e-01 : f32
    %95 = vector.broadcast %cst_21 : f32 to vector<4x512xf32>
    %96 = arith.mulf %95, %94 : vector<4x512xf32>
    %97 = vector.extract_strided_slice %92 {offsets = [4, 0], sizes = [4, 512], strides = [1, 1]} : vector<8x512xf32> to vector<4x512xf32>
    %98 = math.exp %96 : vector<4x512xf32>
    %99 = arith.mulf %1, %98 : vector<4x512xf32>
    %100 = arith.addf %99, %97 : vector<4x512xf32>
    %c1 = arith.constant 1 : index
    %c0_22 = arith.constant 0 : index
    %c0_23 = arith.constant 0 : index
    %101 = vector.load %arg2[%c1, %c0_22, %c0_23] : memref<4x4x4xf32, #tpu.memory_space<vmem>>, vector<1x4x4xf32>
    %102 = vector.shape_cast %101 : vector<1x4x4xf32> to vector<4x4xf32>
    %c1_24 = arith.constant 1 : index
    %c0_25 = arith.constant 0 : index
    %c0_26 = arith.constant 0 : index
    %103 = vector.load %arg3[%c1_24, %c0_25, %c0_26] : memref<4x4x1xf32, #tpu.memory_space<vmem>>, vector<1x4x1xf32>
    %104 = vector.shape_cast %103 : vector<1x4x1xf32> to vector<4x1xf32>
    %105 = vector.extract_strided_slice %102 {offsets = [0, 0], sizes = [4, 1], strides = [1, 1]} : vector<4x4xf32> to vector<4x1xf32>
    %106 = vector.extract_strided_slice %100 {offsets = [0, 0], sizes = [1, 512], strides = [1, 1]} : vector<4x512xf32> to vector<1x512xf32>
    %107 = vector.broadcast %105 : vector<4x1xf32> to vector<4x512xf32>
    %108 = vector.broadcast %106 : vector<1x512xf32> to vector<4x512xf32>
    %109 = arith.mulf %107, %108 : vector<4x512xf32>
    %110 = vector.extract_strided_slice %102 {offsets = [0, 1], sizes = [4, 1], strides = [1, 1]} : vector<4x4xf32> to vector<4x1xf32>
    %111 = vector.extract_strided_slice %100 {offsets = [1, 0], sizes = [1, 512], strides = [1, 1]} : vector<4x512xf32> to vector<1x512xf32>
    %112 = vector.broadcast %110 : vector<4x1xf32> to vector<4x512xf32>
    %113 = vector.broadcast %111 : vector<1x512xf32> to vector<4x512xf32>
    %114 = arith.mulf %112, %113 : vector<4x512xf32>
    %115 = arith.addf %109, %114 : vector<4x512xf32>
    %116 = vector.extract_strided_slice %102 {offsets = [0, 2], sizes = [4, 1], strides = [1, 1]} : vector<4x4xf32> to vector<4x1xf32>
    %117 = vector.extract_strided_slice %100 {offsets = [2, 0], sizes = [1, 512], strides = [1, 1]} : vector<4x512xf32> to vector<1x512xf32>
    %118 = vector.broadcast %116 : vector<4x1xf32> to vector<4x512xf32>
    %119 = vector.broadcast %117 : vector<1x512xf32> to vector<4x512xf32>
    %120 = arith.mulf %118, %119 : vector<4x512xf32>
    %121 = arith.addf %115, %120 : vector<4x512xf32>
    %122 = vector.extract_strided_slice %102 {offsets = [0, 3], sizes = [4, 1], strides = [1, 1]} : vector<4x4xf32> to vector<4x1xf32>
    %123 = vector.extract_strided_slice %100 {offsets = [3, 0], sizes = [1, 512], strides = [1, 1]} : vector<4x512xf32> to vector<1x512xf32>
    %124 = vector.broadcast %122 : vector<4x1xf32> to vector<4x512xf32>
    %125 = vector.broadcast %123 : vector<1x512xf32> to vector<4x512xf32>
    %126 = arith.mulf %124, %125 : vector<4x512xf32>
    %127 = arith.addf %121, %126 : vector<4x512xf32>
    %128 = vector.broadcast %104 : vector<4x1xf32> to vector<4x512xf32>
    %129 = arith.addf %127, %128 : vector<4x512xf32>
    %cst_27 = arith.constant 0.000000e+00 : f32
    %130 = vector.broadcast %cst_27 : f32 to vector<4x512xf32>
    %131 = arith.maximumf %129, %130 : vector<4x512xf32>
    %c1_28 = arith.constant 1 : index
    %c0_29 = arith.constant 0 : index
    %c0_30 = arith.constant 0 : index
    %132 = vector.load %arg4[%c1_28, %c0_29, %c0_30] : memref<4x4x4xf32, #tpu.memory_space<vmem>>, vector<1x4x4xf32>
    %133 = vector.shape_cast %132 : vector<1x4x4xf32> to vector<4x4xf32>
    %c1_31 = arith.constant 1 : index
    %c0_32 = arith.constant 0 : index
    %c0_33 = arith.constant 0 : index
    %134 = vector.load %arg5[%c1_31, %c0_32, %c0_33] : memref<4x4x1xf32, #tpu.memory_space<vmem>>, vector<1x4x1xf32>
    %135 = vector.shape_cast %134 : vector<1x4x1xf32> to vector<4x1xf32>
    %136 = vector.extract_strided_slice %133 {offsets = [0, 0], sizes = [4, 1], strides = [1, 1]} : vector<4x4xf32> to vector<4x1xf32>
    %137 = vector.extract_strided_slice %131 {offsets = [0, 0], sizes = [1, 512], strides = [1, 1]} : vector<4x512xf32> to vector<1x512xf32>
    %138 = vector.broadcast %136 : vector<4x1xf32> to vector<4x512xf32>
    %139 = vector.broadcast %137 : vector<1x512xf32> to vector<4x512xf32>
    %140 = arith.mulf %138, %139 : vector<4x512xf32>
    %141 = vector.extract_strided_slice %133 {offsets = [0, 1], sizes = [4, 1], strides = [1, 1]} : vector<4x4xf32> to vector<4x1xf32>
    %142 = vector.extract_strided_slice %131 {offsets = [1, 0], sizes = [1, 512], strides = [1, 1]} : vector<4x512xf32> to vector<1x512xf32>
    %143 = vector.broadcast %141 : vector<4x1xf32> to vector<4x512xf32>
    %144 = vector.broadcast %142 : vector<1x512xf32> to vector<4x512xf32>
    %145 = arith.mulf %143, %144 : vector<4x512xf32>
    %146 = arith.addf %140, %145 : vector<4x512xf32>
    %147 = vector.extract_strided_slice %133 {offsets = [0, 2], sizes = [4, 1], strides = [1, 1]} : vector<4x4xf32> to vector<4x1xf32>
    %148 = vector.extract_strided_slice %131 {offsets = [2, 0], sizes = [1, 512], strides = [1, 1]} : vector<4x512xf32> to vector<1x512xf32>
    %149 = vector.broadcast %147 : vector<4x1xf32> to vector<4x512xf32>
    %150 = vector.broadcast %148 : vector<1x512xf32> to vector<4x512xf32>
    %151 = arith.mulf %149, %150 : vector<4x512xf32>
    %152 = arith.addf %146, %151 : vector<4x512xf32>
    %153 = vector.extract_strided_slice %133 {offsets = [0, 3], sizes = [4, 1], strides = [1, 1]} : vector<4x4xf32> to vector<4x1xf32>
    %154 = vector.extract_strided_slice %131 {offsets = [3, 0], sizes = [1, 512], strides = [1, 1]} : vector<4x512xf32> to vector<1x512xf32>
    %155 = vector.broadcast %153 : vector<4x1xf32> to vector<4x512xf32>
    %156 = vector.broadcast %154 : vector<1x512xf32> to vector<4x512xf32>
    %157 = arith.mulf %155, %156 : vector<4x512xf32>
    %158 = arith.addf %152, %157 : vector<4x512xf32>
    %159 = vector.broadcast %135 : vector<4x1xf32> to vector<4x512xf32>
    %160 = arith.addf %158, %159 : vector<4x512xf32>
    %cst_34 = arith.constant 0.000000e+00 : f32
    %161 = vector.broadcast %cst_34 : f32 to vector<4x512xf32>
    %162 = arith.maximumf %160, %161 : vector<4x512xf32>
    %c1_35 = arith.constant 1 : index
    %c0_36 = arith.constant 0 : index
    %c0_37 = arith.constant 0 : index
    %163 = vector.load %arg6[%c1_35, %c0_36, %c0_37] : memref<4x8x4xf32, #tpu.memory_space<vmem>>, vector<1x8x4xf32>
    %164 = vector.shape_cast %163 : vector<1x8x4xf32> to vector<8x4xf32>
    %c1_38 = arith.constant 1 : index
    %c0_39 = arith.constant 0 : index
    %c0_40 = arith.constant 0 : index
    %165 = vector.load %arg7[%c1_38, %c0_39, %c0_40] : memref<4x8x1xf32, #tpu.memory_space<vmem>>, vector<1x8x1xf32>
    %166 = vector.shape_cast %165 : vector<1x8x1xf32> to vector<8x1xf32>
    %167 = vector.extract_strided_slice %164 {offsets = [0, 0], sizes = [8, 1], strides = [1, 1]} : vector<8x4xf32> to vector<8x1xf32>
    %168 = vector.extract_strided_slice %162 {offsets = [0, 0], sizes = [1, 512], strides = [1, 1]} : vector<4x512xf32> to vector<1x512xf32>
    %169 = vector.broadcast %167 : vector<8x1xf32> to vector<8x512xf32>
    %170 = vector.broadcast %168 : vector<1x512xf32> to vector<8x512xf32>
    %171 = arith.mulf %169, %170 : vector<8x512xf32>
    %172 = vector.extract_strided_slice %164 {offsets = [0, 1], sizes = [8, 1], strides = [1, 1]} : vector<8x4xf32> to vector<8x1xf32>
    %173 = vector.extract_strided_slice %162 {offsets = [1, 0], sizes = [1, 512], strides = [1, 1]} : vector<4x512xf32> to vector<1x512xf32>
    %174 = vector.broadcast %172 : vector<8x1xf32> to vector<8x512xf32>
    %175 = vector.broadcast %173 : vector<1x512xf32> to vector<8x512xf32>
    %176 = arith.mulf %174, %175 : vector<8x512xf32>
    %177 = arith.addf %171, %176 : vector<8x512xf32>
    %178 = vector.extract_strided_slice %164 {offsets = [0, 2], sizes = [8, 1], strides = [1, 1]} : vector<8x4xf32> to vector<8x1xf32>
    %179 = vector.extract_strided_slice %162 {offsets = [2, 0], sizes = [1, 512], strides = [1, 1]} : vector<4x512xf32> to vector<1x512xf32>
    %180 = vector.broadcast %178 : vector<8x1xf32> to vector<8x512xf32>
    %181 = vector.broadcast %179 : vector<1x512xf32> to vector<8x512xf32>
    %182 = arith.mulf %180, %181 : vector<8x512xf32>
    %183 = arith.addf %177, %182 : vector<8x512xf32>
    %184 = vector.extract_strided_slice %164 {offsets = [0, 3], sizes = [8, 1], strides = [1, 1]} : vector<8x4xf32> to vector<8x1xf32>
    %185 = vector.extract_strided_slice %162 {offsets = [3, 0], sizes = [1, 512], strides = [1, 1]} : vector<4x512xf32> to vector<1x512xf32>
    %186 = vector.broadcast %184 : vector<8x1xf32> to vector<8x512xf32>
    %187 = vector.broadcast %185 : vector<1x512xf32> to vector<8x512xf32>
    %188 = arith.mulf %186, %187 : vector<8x512xf32>
    %189 = arith.addf %183, %188 : vector<8x512xf32>
    %190 = vector.broadcast %166 : vector<8x1xf32> to vector<8x512xf32>
    %191 = arith.addf %189, %190 : vector<8x512xf32>
    %192 = vector.extract_strided_slice %191 {offsets = [0, 0], sizes = [4, 512], strides = [1, 1]} : vector<8x512xf32> to vector<4x512xf32>
    %193 = math.tanh %192 : vector<4x512xf32>
    %cst_41 = arith.constant 1.000000e-01 : f32
    %194 = vector.broadcast %cst_41 : f32 to vector<4x512xf32>
    %195 = arith.mulf %194, %193 : vector<4x512xf32>
    %196 = vector.extract_strided_slice %191 {offsets = [4, 0], sizes = [4, 512], strides = [1, 1]} : vector<8x512xf32> to vector<4x512xf32>
    %197 = math.exp %195 : vector<4x512xf32>
    %198 = arith.mulf %0, %197 : vector<4x512xf32>
    %199 = arith.addf %198, %196 : vector<4x512xf32>
    %200 = vector.extract_strided_slice %199 {offsets = [2, 0], sizes = [1, 512], strides = [1, 1]} : vector<4x512xf32> to vector<1x512xf32>
    %201 = vector.extract_strided_slice %100 {offsets = [0, 0], sizes = [1, 512], strides = [1, 1]} : vector<4x512xf32> to vector<1x512xf32>
    %202 = vector.extract_strided_slice %199 {offsets = [3, 0], sizes = [1, 512], strides = [1, 1]} : vector<4x512xf32> to vector<1x512xf32>
    %203 = vector.extract_strided_slice %100 {offsets = [2, 0], sizes = [1, 512], strides = [1, 1]} : vector<4x512xf32> to vector<1x512xf32>
    %204 = tpu.concatenate %200, %201, %202, %203 in 0 : vector<1x512xf32>, vector<1x512xf32>, vector<1x512xf32>, vector<1x512xf32> -> vector<4x512xf32>
    %205 = vector.extract_strided_slice %100 {offsets = [1, 0], sizes = [1, 512], strides = [1, 1]} : vector<4x512xf32> to vector<1x512xf32>
    %206 = vector.extract_strided_slice %199 {offsets = [0, 0], sizes = [1, 512], strides = [1, 1]} : vector<4x512xf32> to vector<1x512xf32>
    %207 = vector.extract_strided_slice %199 {offsets = [1, 0], sizes = [1, 512], strides = [1, 1]} : vector<4x512xf32> to vector<1x512xf32>
    %208 = vector.extract_strided_slice %100 {offsets = [3, 0], sizes = [1, 512], strides = [1, 1]} : vector<4x512xf32> to vector<1x512xf32>
    %209 = tpu.concatenate %205, %206, %207, %208 in 0 : vector<1x512xf32>, vector<1x512xf32>, vector<1x512xf32>, vector<1x512xf32> -> vector<4x512xf32>
    %c2 = arith.constant 2 : index
    %c0_42 = arith.constant 0 : index
    %c0_43 = arith.constant 0 : index
    %210 = vector.load %arg2[%c2, %c0_42, %c0_43] : memref<4x4x4xf32, #tpu.memory_space<vmem>>, vector<1x4x4xf32>
    %211 = vector.shape_cast %210 : vector<1x4x4xf32> to vector<4x4xf32>
    %c2_44 = arith.constant 2 : index
    %c0_45 = arith.constant 0 : index
    %c0_46 = arith.constant 0 : index
    %212 = vector.load %arg3[%c2_44, %c0_45, %c0_46] : memref<4x4x1xf32, #tpu.memory_space<vmem>>, vector<1x4x1xf32>
    %213 = vector.shape_cast %212 : vector<1x4x1xf32> to vector<4x1xf32>
    %214 = vector.extract_strided_slice %211 {offsets = [0, 0], sizes = [4, 1], strides = [1, 1]} : vector<4x4xf32> to vector<4x1xf32>
    %215 = vector.extract_strided_slice %204 {offsets = [0, 0], sizes = [1, 512], strides = [1, 1]} : vector<4x512xf32> to vector<1x512xf32>
    %216 = vector.broadcast %214 : vector<4x1xf32> to vector<4x512xf32>
    %217 = vector.broadcast %215 : vector<1x512xf32> to vector<4x512xf32>
    %218 = arith.mulf %216, %217 : vector<4x512xf32>
    %219 = vector.extract_strided_slice %211 {offsets = [0, 1], sizes = [4, 1], strides = [1, 1]} : vector<4x4xf32> to vector<4x1xf32>
    %220 = vector.extract_strided_slice %204 {offsets = [1, 0], sizes = [1, 512], strides = [1, 1]} : vector<4x512xf32> to vector<1x512xf32>
    %221 = vector.broadcast %219 : vector<4x1xf32> to vector<4x512xf32>
    %222 = vector.broadcast %220 : vector<1x512xf32> to vector<4x512xf32>
    %223 = arith.mulf %221, %222 : vector<4x512xf32>
    %224 = arith.addf %218, %223 : vector<4x512xf32>
    %225 = vector.extract_strided_slice %211 {offsets = [0, 2], sizes = [4, 1], strides = [1, 1]} : vector<4x4xf32> to vector<4x1xf32>
    %226 = vector.extract_strided_slice %204 {offsets = [2, 0], sizes = [1, 512], strides = [1, 1]} : vector<4x512xf32> to vector<1x512xf32>
    %227 = vector.broadcast %225 : vector<4x1xf32> to vector<4x512xf32>
    %228 = vector.broadcast %226 : vector<1x512xf32> to vector<4x512xf32>
    %229 = arith.mulf %227, %228 : vector<4x512xf32>
    %230 = arith.addf %224, %229 : vector<4x512xf32>
    %231 = vector.extract_strided_slice %211 {offsets = [0, 3], sizes = [4, 1], strides = [1, 1]} : vector<4x4xf32> to vector<4x1xf32>
    %232 = vector.extract_strided_slice %204 {offsets = [3, 0], sizes = [1, 512], strides = [1, 1]} : vector<4x512xf32> to vector<1x512xf32>
    %233 = vector.broadcast %231 : vector<4x1xf32> to vector<4x512xf32>
    %234 = vector.broadcast %232 : vector<1x512xf32> to vector<4x512xf32>
    %235 = arith.mulf %233, %234 : vector<4x512xf32>
    %236 = arith.addf %230, %235 : vector<4x512xf32>
    %237 = vector.broadcast %213 : vector<4x1xf32> to vector<4x512xf32>
    %238 = arith.addf %236, %237 : vector<4x512xf32>
    %cst_47 = arith.constant 0.000000e+00 : f32
    %239 = vector.broadcast %cst_47 : f32 to vector<4x512xf32>
    %240 = arith.maximumf %238, %239 : vector<4x512xf32>
    %c2_48 = arith.constant 2 : index
    %c0_49 = arith.constant 0 : index
    %c0_50 = arith.constant 0 : index
    %241 = vector.load %arg4[%c2_48, %c0_49, %c0_50] : memref<4x4x4xf32, #tpu.memory_space<vmem>>, vector<1x4x4xf32>
    %242 = vector.shape_cast %241 : vector<1x4x4xf32> to vector<4x4xf32>
    %c2_51 = arith.constant 2 : index
    %c0_52 = arith.constant 0 : index
    %c0_53 = arith.constant 0 : index
    %243 = vector.load %arg5[%c2_51, %c0_52, %c0_53] : memref<4x4x1xf32, #tpu.memory_space<vmem>>, vector<1x4x1xf32>
    %244 = vector.shape_cast %243 : vector<1x4x1xf32> to vector<4x1xf32>
    %245 = vector.extract_strided_slice %242 {offsets = [0, 0], sizes = [4, 1], strides = [1, 1]} : vector<4x4xf32> to vector<4x1xf32>
    %246 = vector.extract_strided_slice %240 {offsets = [0, 0], sizes = [1, 512], strides = [1, 1]} : vector<4x512xf32> to vector<1x512xf32>
    %247 = vector.broadcast %245 : vector<4x1xf32> to vector<4x512xf32>
    %248 = vector.broadcast %246 : vector<1x512xf32> to vector<4x512xf32>
    %249 = arith.mulf %247, %248 : vector<4x512xf32>
    %250 = vector.extract_strided_slice %242 {offsets = [0, 1], sizes = [4, 1], strides = [1, 1]} : vector<4x4xf32> to vector<4x1xf32>
    %251 = vector.extract_strided_slice %240 {offsets = [1, 0], sizes = [1, 512], strides = [1, 1]} : vector<4x512xf32> to vector<1x512xf32>
    %252 = vector.broadcast %250 : vector<4x1xf32> to vector<4x512xf32>
    %253 = vector.broadcast %251 : vector<1x512xf32> to vector<4x512xf32>
    %254 = arith.mulf %252, %253 : vector<4x512xf32>
    %255 = arith.addf %249, %254 : vector<4x512xf32>
    %256 = vector.extract_strided_slice %242 {offsets = [0, 2], sizes = [4, 1], strides = [1, 1]} : vector<4x4xf32> to vector<4x1xf32>
    %257 = vector.extract_strided_slice %240 {offsets = [2, 0], sizes = [1, 512], strides = [1, 1]} : vector<4x512xf32> to vector<1x512xf32>
    %258 = vector.broadcast %256 : vector<4x1xf32> to vector<4x512xf32>
    %259 = vector.broadcast %257 : vector<1x512xf32> to vector<4x512xf32>
    %260 = arith.mulf %258, %259 : vector<4x512xf32>
    %261 = arith.addf %255, %260 : vector<4x512xf32>
    %262 = vector.extract_strided_slice %242 {offsets = [0, 3], sizes = [4, 1], strides = [1, 1]} : vector<4x4xf32> to vector<4x1xf32>
    %263 = vector.extract_strided_slice %240 {offsets = [3, 0], sizes = [1, 512], strides = [1, 1]} : vector<4x512xf32> to vector<1x512xf32>
    %264 = vector.broadcast %262 : vector<4x1xf32> to vector<4x512xf32>
    %265 = vector.broadcast %263 : vector<1x512xf32> to vector<4x512xf32>
    %266 = arith.mulf %264, %265 : vector<4x512xf32>
    %267 = arith.addf %261, %266 : vector<4x512xf32>
    %268 = vector.broadcast %244 : vector<4x1xf32> to vector<4x512xf32>
    %269 = arith.addf %267, %268 : vector<4x512xf32>
    %cst_54 = arith.constant 0.000000e+00 : f32
    %270 = vector.broadcast %cst_54 : f32 to vector<4x512xf32>
    %271 = arith.maximumf %269, %270 : vector<4x512xf32>
    %c2_55 = arith.constant 2 : index
    %c0_56 = arith.constant 0 : index
    %c0_57 = arith.constant 0 : index
    %272 = vector.load %arg6[%c2_55, %c0_56, %c0_57] : memref<4x8x4xf32, #tpu.memory_space<vmem>>, vector<1x8x4xf32>
    %273 = vector.shape_cast %272 : vector<1x8x4xf32> to vector<8x4xf32>
    %c2_58 = arith.constant 2 : index
    %c0_59 = arith.constant 0 : index
    %c0_60 = arith.constant 0 : index
    %274 = vector.load %arg7[%c2_58, %c0_59, %c0_60] : memref<4x8x1xf32, #tpu.memory_space<vmem>>, vector<1x8x1xf32>
    %275 = vector.shape_cast %274 : vector<1x8x1xf32> to vector<8x1xf32>
    %276 = vector.extract_strided_slice %273 {offsets = [0, 0], sizes = [8, 1], strides = [1, 1]} : vector<8x4xf32> to vector<8x1xf32>
    %277 = vector.extract_strided_slice %271 {offsets = [0, 0], sizes = [1, 512], strides = [1, 1]} : vector<4x512xf32> to vector<1x512xf32>
    %278 = vector.broadcast %276 : vector<8x1xf32> to vector<8x512xf32>
    %279 = vector.broadcast %277 : vector<1x512xf32> to vector<8x512xf32>
    %280 = arith.mulf %278, %279 : vector<8x512xf32>
    %281 = vector.extract_strided_slice %273 {offsets = [0, 1], sizes = [8, 1], strides = [1, 1]} : vector<8x4xf32> to vector<8x1xf32>
    %282 = vector.extract_strided_slice %271 {offsets = [1, 0], sizes = [1, 512], strides = [1, 1]} : vector<4x512xf32> to vector<1x512xf32>
    %283 = vector.broadcast %281 : vector<8x1xf32> to vector<8x512xf32>
    %284 = vector.broadcast %282 : vector<1x512xf32> to vector<8x512xf32>
    %285 = arith.mulf %283, %284 : vector<8x512xf32>
    %286 = arith.addf %280, %285 : vector<8x512xf32>
    %287 = vector.extract_strided_slice %273 {offsets = [0, 2], sizes = [8, 1], strides = [1, 1]} : vector<8x4xf32> to vector<8x1xf32>
    %288 = vector.extract_strided_slice %271 {offsets = [2, 0], sizes = [1, 512], strides = [1, 1]} : vector<4x512xf32> to vector<1x512xf32>
    %289 = vector.broadcast %287 : vector<8x1xf32> to vector<8x512xf32>
    %290 = vector.broadcast %288 : vector<1x512xf32> to vector<8x512xf32>
    %291 = arith.mulf %289, %290 : vector<8x512xf32>
    %292 = arith.addf %286, %291 : vector<8x512xf32>
    %293 = vector.extract_strided_slice %273 {offsets = [0, 3], sizes = [8, 1], strides = [1, 1]} : vector<8x4xf32> to vector<8x1xf32>
    %294 = vector.extract_strided_slice %271 {offsets = [3, 0], sizes = [1, 512], strides = [1, 1]} : vector<4x512xf32> to vector<1x512xf32>
    %295 = vector.broadcast %293 : vector<8x1xf32> to vector<8x512xf32>
    %296 = vector.broadcast %294 : vector<1x512xf32> to vector<8x512xf32>
    %297 = arith.mulf %295, %296 : vector<8x512xf32>
    %298 = arith.addf %292, %297 : vector<8x512xf32>
    %299 = vector.broadcast %275 : vector<8x1xf32> to vector<8x512xf32>
    %300 = arith.addf %298, %299 : vector<8x512xf32>
    %301 = vector.extract_strided_slice %300 {offsets = [0, 0], sizes = [4, 512], strides = [1, 1]} : vector<8x512xf32> to vector<4x512xf32>
    %302 = math.tanh %301 : vector<4x512xf32>
    %cst_61 = arith.constant 1.000000e-01 : f32
    %303 = vector.broadcast %cst_61 : f32 to vector<4x512xf32>
    %304 = arith.mulf %303, %302 : vector<4x512xf32>
    %305 = vector.extract_strided_slice %300 {offsets = [4, 0], sizes = [4, 512], strides = [1, 1]} : vector<8x512xf32> to vector<4x512xf32>
    %306 = math.exp %304 : vector<4x512xf32>
    %307 = arith.mulf %209, %306 : vector<4x512xf32>
    %308 = arith.addf %307, %305 : vector<4x512xf32>
    %c3 = arith.constant 3 : index
    %c0_62 = arith.constant 0 : index
    %c0_63 = arith.constant 0 : index
    %309 = vector.load %arg2[%c3, %c0_62, %c0_63] : memref<4x4x4xf32, #tpu.memory_space<vmem>>, vector<1x4x4xf32>
    %310 = vector.shape_cast %309 : vector<1x4x4xf32> to vector<4x4xf32>
    %c3_64 = arith.constant 3 : index
    %c0_65 = arith.constant 0 : index
    %c0_66 = arith.constant 0 : index
    %311 = vector.load %arg3[%c3_64, %c0_65, %c0_66] : memref<4x4x1xf32, #tpu.memory_space<vmem>>, vector<1x4x1xf32>
    %312 = vector.shape_cast %311 : vector<1x4x1xf32> to vector<4x1xf32>
    %313 = vector.extract_strided_slice %310 {offsets = [0, 0], sizes = [4, 1], strides = [1, 1]} : vector<4x4xf32> to vector<4x1xf32>
    %314 = vector.extract_strided_slice %308 {offsets = [0, 0], sizes = [1, 512], strides = [1, 1]} : vector<4x512xf32> to vector<1x512xf32>
    %315 = vector.broadcast %313 : vector<4x1xf32> to vector<4x512xf32>
    %316 = vector.broadcast %314 : vector<1x512xf32> to vector<4x512xf32>
    %317 = arith.mulf %315, %316 : vector<4x512xf32>
    %318 = vector.extract_strided_slice %310 {offsets = [0, 1], sizes = [4, 1], strides = [1, 1]} : vector<4x4xf32> to vector<4x1xf32>
    %319 = vector.extract_strided_slice %308 {offsets = [1, 0], sizes = [1, 512], strides = [1, 1]} : vector<4x512xf32> to vector<1x512xf32>
    %320 = vector.broadcast %318 : vector<4x1xf32> to vector<4x512xf32>
    %321 = vector.broadcast %319 : vector<1x512xf32> to vector<4x512xf32>
    %322 = arith.mulf %320, %321 : vector<4x512xf32>
    %323 = arith.addf %317, %322 : vector<4x512xf32>
    %324 = vector.extract_strided_slice %310 {offsets = [0, 2], sizes = [4, 1], strides = [1, 1]} : vector<4x4xf32> to vector<4x1xf32>
    %325 = vector.extract_strided_slice %308 {offsets = [2, 0], sizes = [1, 512], strides = [1, 1]} : vector<4x512xf32> to vector<1x512xf32>
    %326 = vector.broadcast %324 : vector<4x1xf32> to vector<4x512xf32>
    %327 = vector.broadcast %325 : vector<1x512xf32> to vector<4x512xf32>
    %328 = arith.mulf %326, %327 : vector<4x512xf32>
    %329 = arith.addf %323, %328 : vector<4x512xf32>
    %330 = vector.extract_strided_slice %310 {offsets = [0, 3], sizes = [4, 1], strides = [1, 1]} : vector<4x4xf32> to vector<4x1xf32>
    %331 = vector.extract_strided_slice %308 {offsets = [3, 0], sizes = [1, 512], strides = [1, 1]} : vector<4x512xf32> to vector<1x512xf32>
    %332 = vector.broadcast %330 : vector<4x1xf32> to vector<4x512xf32>
    %333 = vector.broadcast %331 : vector<1x512xf32> to vector<4x512xf32>
    %334 = arith.mulf %332, %333 : vector<4x512xf32>
    %335 = arith.addf %329, %334 : vector<4x512xf32>
    %336 = vector.broadcast %312 : vector<4x1xf32> to vector<4x512xf32>
    %337 = arith.addf %335, %336 : vector<4x512xf32>
    %cst_67 = arith.constant 0.000000e+00 : f32
    %338 = vector.broadcast %cst_67 : f32 to vector<4x512xf32>
    %339 = arith.maximumf %337, %338 : vector<4x512xf32>
    %c3_68 = arith.constant 3 : index
    %c0_69 = arith.constant 0 : index
    %c0_70 = arith.constant 0 : index
    %340 = vector.load %arg4[%c3_68, %c0_69, %c0_70] : memref<4x4x4xf32, #tpu.memory_space<vmem>>, vector<1x4x4xf32>
    %341 = vector.shape_cast %340 : vector<1x4x4xf32> to vector<4x4xf32>
    %c3_71 = arith.constant 3 : index
    %c0_72 = arith.constant 0 : index
    %c0_73 = arith.constant 0 : index
    %342 = vector.load %arg5[%c3_71, %c0_72, %c0_73] : memref<4x4x1xf32, #tpu.memory_space<vmem>>, vector<1x4x1xf32>
    %343 = vector.shape_cast %342 : vector<1x4x1xf32> to vector<4x1xf32>
    %344 = vector.extract_strided_slice %341 {offsets = [0, 0], sizes = [4, 1], strides = [1, 1]} : vector<4x4xf32> to vector<4x1xf32>
    %345 = vector.extract_strided_slice %339 {offsets = [0, 0], sizes = [1, 512], strides = [1, 1]} : vector<4x512xf32> to vector<1x512xf32>
    %346 = vector.broadcast %344 : vector<4x1xf32> to vector<4x512xf32>
    %347 = vector.broadcast %345 : vector<1x512xf32> to vector<4x512xf32>
    %348 = arith.mulf %346, %347 : vector<4x512xf32>
    %349 = vector.extract_strided_slice %341 {offsets = [0, 1], sizes = [4, 1], strides = [1, 1]} : vector<4x4xf32> to vector<4x1xf32>
    %350 = vector.extract_strided_slice %339 {offsets = [1, 0], sizes = [1, 512], strides = [1, 1]} : vector<4x512xf32> to vector<1x512xf32>
    %351 = vector.broadcast %349 : vector<4x1xf32> to vector<4x512xf32>
    %352 = vector.broadcast %350 : vector<1x512xf32> to vector<4x512xf32>
    %353 = arith.mulf %351, %352 : vector<4x512xf32>
    %354 = arith.addf %348, %353 : vector<4x512xf32>
    %355 = vector.extract_strided_slice %341 {offsets = [0, 2], sizes = [4, 1], strides = [1, 1]} : vector<4x4xf32> to vector<4x1xf32>
    %356 = vector.extract_strided_slice %339 {offsets = [2, 0], sizes = [1, 512], strides = [1, 1]} : vector<4x512xf32> to vector<1x512xf32>
    %357 = vector.broadcast %355 : vector<4x1xf32> to vector<4x512xf32>
    %358 = vector.broadcast %356 : vector<1x512xf32> to vector<4x512xf32>
    %359 = arith.mulf %357, %358 : vector<4x512xf32>
    %360 = arith.addf %354, %359 : vector<4x512xf32>
    %361 = vector.extract_strided_slice %341 {offsets = [0, 3], sizes = [4, 1], strides = [1, 1]} : vector<4x4xf32> to vector<4x1xf32>
    %362 = vector.extract_strided_slice %339 {offsets = [3, 0], sizes = [1, 512], strides = [1, 1]} : vector<4x512xf32> to vector<1x512xf32>
    %363 = vector.broadcast %361 : vector<4x1xf32> to vector<4x512xf32>
    %364 = vector.broadcast %362 : vector<1x512xf32> to vector<4x512xf32>
    %365 = arith.mulf %363, %364 : vector<4x512xf32>
    %366 = arith.addf %360, %365 : vector<4x512xf32>
    %367 = vector.broadcast %343 : vector<4x1xf32> to vector<4x512xf32>
    %368 = arith.addf %366, %367 : vector<4x512xf32>
    %cst_74 = arith.constant 0.000000e+00 : f32
    %369 = vector.broadcast %cst_74 : f32 to vector<4x512xf32>
    %370 = arith.maximumf %368, %369 : vector<4x512xf32>
    %c3_75 = arith.constant 3 : index
    %c0_76 = arith.constant 0 : index
    %c0_77 = arith.constant 0 : index
    %371 = vector.load %arg6[%c3_75, %c0_76, %c0_77] : memref<4x8x4xf32, #tpu.memory_space<vmem>>, vector<1x8x4xf32>
    %372 = vector.shape_cast %371 : vector<1x8x4xf32> to vector<8x4xf32>
    %c3_78 = arith.constant 3 : index
    %c0_79 = arith.constant 0 : index
    %c0_80 = arith.constant 0 : index
    %373 = vector.load %arg7[%c3_78, %c0_79, %c0_80] : memref<4x8x1xf32, #tpu.memory_space<vmem>>, vector<1x8x1xf32>
    %374 = vector.shape_cast %373 : vector<1x8x1xf32> to vector<8x1xf32>
    %375 = vector.extract_strided_slice %372 {offsets = [0, 0], sizes = [8, 1], strides = [1, 1]} : vector<8x4xf32> to vector<8x1xf32>
    %376 = vector.extract_strided_slice %370 {offsets = [0, 0], sizes = [1, 512], strides = [1, 1]} : vector<4x512xf32> to vector<1x512xf32>
    %377 = vector.broadcast %375 : vector<8x1xf32> to vector<8x512xf32>
    %378 = vector.broadcast %376 : vector<1x512xf32> to vector<8x512xf32>
    %379 = arith.mulf %377, %378 : vector<8x512xf32>
    %380 = vector.extract_strided_slice %372 {offsets = [0, 1], sizes = [8, 1], strides = [1, 1]} : vector<8x4xf32> to vector<8x1xf32>
    %381 = vector.extract_strided_slice %370 {offsets = [1, 0], sizes = [1, 512], strides = [1, 1]} : vector<4x512xf32> to vector<1x512xf32>
    %382 = vector.broadcast %380 : vector<8x1xf32> to vector<8x512xf32>
    %383 = vector.broadcast %381 : vector<1x512xf32> to vector<8x512xf32>
    %384 = arith.mulf %382, %383 : vector<8x512xf32>
    %385 = arith.addf %379, %384 : vector<8x512xf32>
    %386 = vector.extract_strided_slice %372 {offsets = [0, 2], sizes = [8, 1], strides = [1, 1]} : vector<8x4xf32> to vector<8x1xf32>
    %387 = vector.extract_strided_slice %370 {offsets = [2, 0], sizes = [1, 512], strides = [1, 1]} : vector<4x512xf32> to vector<1x512xf32>
    %388 = vector.broadcast %386 : vector<8x1xf32> to vector<8x512xf32>
    %389 = vector.broadcast %387 : vector<1x512xf32> to vector<8x512xf32>
    %390 = arith.mulf %388, %389 : vector<8x512xf32>
    %391 = arith.addf %385, %390 : vector<8x512xf32>
    %392 = vector.extract_strided_slice %372 {offsets = [0, 3], sizes = [8, 1], strides = [1, 1]} : vector<8x4xf32> to vector<8x1xf32>
    %393 = vector.extract_strided_slice %370 {offsets = [3, 0], sizes = [1, 512], strides = [1, 1]} : vector<4x512xf32> to vector<1x512xf32>
    %394 = vector.broadcast %392 : vector<8x1xf32> to vector<8x512xf32>
    %395 = vector.broadcast %393 : vector<1x512xf32> to vector<8x512xf32>
    %396 = arith.mulf %394, %395 : vector<8x512xf32>
    %397 = arith.addf %391, %396 : vector<8x512xf32>
    %398 = vector.broadcast %374 : vector<8x1xf32> to vector<8x512xf32>
    %399 = arith.addf %397, %398 : vector<8x512xf32>
    %400 = vector.extract_strided_slice %399 {offsets = [0, 0], sizes = [4, 512], strides = [1, 1]} : vector<8x512xf32> to vector<4x512xf32>
    %401 = math.tanh %400 : vector<4x512xf32>
    %cst_81 = arith.constant 1.000000e-01 : f32
    %402 = vector.broadcast %cst_81 : f32 to vector<4x512xf32>
    %403 = arith.mulf %402, %401 : vector<4x512xf32>
    %404 = vector.extract_strided_slice %399 {offsets = [4, 0], sizes = [4, 512], strides = [1, 1]} : vector<8x512xf32> to vector<4x512xf32>
    %405 = math.exp %403 : vector<4x512xf32>
    %406 = arith.mulf %204, %405 : vector<4x512xf32>
    %407 = arith.addf %406, %404 : vector<4x512xf32>
    %c0_82 = arith.constant 0 : index
    %c0_83 = arith.constant 0 : index
    %408 = vector.load %arg8[%c0_82, %c0_83] : memref<8x512xf32, #tpu.memory_space<vmem>>, vector<4x512xf32>
    tpu.vector_store %arg8[%c0_82, %c0_83], %407 {strides = array<i32>} : memref<8x512xf32, #tpu.memory_space<vmem>>, vector<4x512xf32>,
    %c4_84 = arith.constant 4 : index
    %c0_85 = arith.constant 0 : index
    %409 = vector.load %arg8[%c4_84, %c0_85] : memref<8x512xf32, #tpu.memory_space<vmem>>, vector<4x512xf32>
    tpu.vector_store %arg8[%c4_84, %c0_85], %308 {strides = array<i32>} : memref<8x512xf32, #tpu.memory_space<vmem>>, vector<4x512xf32>,
    return
  }
  func.func @transform_0(%arg0: i32) -> (i32, i32) {
    %c0_i32 = arith.constant 0 : i32
    %c0_i32_0 = arith.constant 0 : i32
    return %c0_i32, %arg0 : i32, i32
  }
  func.func @transform_1(%arg0: i32) -> (i32, i32, i32) {
    %c0_i32 = arith.constant 0 : i32
    %c0_i32_0 = arith.constant 0 : i32
    %c0_i32_1 = arith.constant 0 : i32
    %c0_i32_2 = arith.constant 0 : i32
    return %c0_i32, %c0_i32_0, %c0_i32_1 : i32, i32, i32
  }
  func.func @transform_2(%arg0: i32) -> (i32, i32, i32) {
    %c0_i32 = arith.constant 0 : i32
    %c0_i32_0 = arith.constant 0 : i32
    %c0_i32_1 = arith.constant 0 : i32
    %c0_i32_2 = arith.constant 0 : i32
    return %c0_i32, %c0_i32_0, %c0_i32_1 : i32, i32, i32
  }
  func.func @transform_3(%arg0: i32) -> (i32, i32, i32) {
    %c0_i32 = arith.constant 0 : i32
    %c0_i32_0 = arith.constant 0 : i32
    %c0_i32_1 = arith.constant 0 : i32
    %c0_i32_2 = arith.constant 0 : i32
    return %c0_i32, %c0_i32_0, %c0_i32_1 : i32, i32, i32
  }
  func.func @transform_4(%arg0: i32) -> (i32, i32, i32) {
    %c0_i32 = arith.constant 0 : i32
    %c0_i32_0 = arith.constant 0 : i32
    %c0_i32_1 = arith.constant 0 : i32
    %c0_i32_2 = arith.constant 0 : i32
    return %c0_i32, %c0_i32_0, %c0_i32_1 : i32, i32, i32
  }
  func.func @transform_5(%arg0: i32) -> (i32, i32, i32) {
    %c0_i32 = arith.constant 0 : i32
    %c0_i32_0 = arith.constant 0 : i32
    %c0_i32_1 = arith.constant 0 : i32
    %c0_i32_2 = arith.constant 0 : i32
    return %c0_i32, %c0_i32_0, %c0_i32_1 : i32, i32, i32
  }
  func.func @transform_6(%arg0: i32) -> (i32, i32, i32) {
    %c0_i32 = arith.constant 0 : i32
    %c0_i32_0 = arith.constant 0 : i32
    %c0_i32_1 = arith.constant 0 : i32
    %c0_i32_2 = arith.constant 0 : i32
    return %c0_i32, %c0_i32_0, %c0_i32_1 : i32, i32, i32
  }
  func.func @transform_7(%arg0: i32) -> (i32, i32) {
    %c0_i32 = arith.constant 0 : i32
    %c0_i32_0 = arith.constant 0 : i32
    return %c0_i32, %arg0 : i32, i32
  }
}

</mosaic_0001>

<bundles_post_ra>
// kernel: realnvp_forward.1
= control target key start
LH: loop header
LB: loop body
LE: loop exit
PB: predicated region body
PF: predicated region fallthrough
CT: control target
= control target key end

     0   :  { %s2296_s24 = smov 0   ;;  %s2832_s0 = inlined_call_operand.vmem [shape: f32[8,1024], index: 0, kind: input, shape index: {}, may-alias: {0,7}]   ;;  %s2833_s1 = inlined_call_operand.vmem [shape: f32[4,4,4], index: 1, kind: input, shape index: {}]   ;;  %s2834_s2 = inlined_call_operand.vmem [shape: f32[4,4,1], index: 2, kind: input, shape index: {}]   ;;  %s2835_s3 = inlined_call_operand.vmem [shape: f32[4,4,4], index: 3, kind: input, shape index: {}]   ;;  %s2836_s4 = inlined_call_operand.vmem [shape: f32[4,4,1], index: 4, kind: input, shape index: {}]   ;;  %s2837_s5 = inlined_call_operand.vmem [shape: f32[4,8,4], index: 5, kind: input, shape index: {}]   ;;  %s2838_s6 = inlined_call_operand.vmem [shape: f32[4,8,1], index: 6, kind: input, shape index: {}]   ;;  %s2839_s7 = inlined_call_operand.vmem [shape: f32[8,1024], index: 7, kind: output, shape index: {}, may-alias: {0,7}]  }
   0x1 LB: > { %s2083_s25 = sadd.s32 4294967295, %s2250_s24   ;;  %p2087_p0 = scmp.ge.s32.totalorder %s2250_s24, 1  ;;  %s2250_s24 = sphi %s2296_s24, %s17_s24  }
   0x2   : > { %p238_p1 = scmp.lt.s32.totalorder %s2250_s24, 3 }
   0x4   : > { %p239_p2 = pnand %p2087_p0, %p238_p1 }
   0x5   : > { %v290_v0 = vld [vmem:[%s2833_s1] sm:$0xf] (!%p239_p2)  ;;  %v2252_v1 = vmov (!%p239_p2), 2   ;;  %v2253_v2 = vmov (!%p239_p2), 0   ;;  %v2254_v3 = vmov (!%p239_p2), 3   ;;  %v2255_v4 = vmov (!%p239_p2), 1  }
   0x6   : > { %242 = sbr.rel (%p239_p2) target bundleno = 471 (0x1d7), region = 48  ;;  %2126 = vset.pattern.permute.xlu1 (!%p239_p2), %v2252_v1  ;;  %2124 = vset.pattern.permute.xlu0 (!%p239_p2), %v2253_v2  ;;  %v291_v5 = vld [vmem:[%s2834_s2] sm:$0xf] (!%p239_p2)  ;;  %v2092_v10 = vld [vmem:[%s2833_s1 + $0x4] sm:$0xf] (!%p239_p2)  ;;  %v2096_v12 = vld [vmem:[%s2837_s5 + $0x8] sm:$0xff] (!%p239_p2)  ;;  %v297_v22 = vlaneseq (!%p239_p2) }
   0x7   : > { %346 = vperm.xlu1 (!%p239_p2), %2126, %v290_v0   ;;  %294 = vperm.xlu0 (!%p239_p2), %2124, %v290_v0   ;;  %v414_v6 = vld [vmem:[%s2835_s3] sm:$0xf] (!%p239_p2)  ;;  %v2094_v11 = vld [vmem:[%s2835_s3 + $0x4] sm:$0xf] (!%p239_p2)  ;;  %v2097_v13 = vld [vmem:[%s2838_s6 + $0x8] sm:$0xff] (!%p239_p2)  ;;  %s2088_s18 = sshll.u32 (!%p239_p2), %s2083_s25, 2 }
   0x8   : > { %v538_v7 = vld [vmem:[%s2837_s5] sm:$0xff] (!%p239_p2)  ;;  %v2098_v14 = vld [vmem:[%s2833_s1 + $0x8] sm:$0xf] (!%p239_p2)  ;;  %v2374_v17 = vld [vmem:[%s2837_s5 + $0x10] sm:$0xff] (!%p239_p2)  ;;  %p271_p3 = scmp.lt.s32.totalorder (!%p239_p2), %s2088_s18, 7  ;;  %v2416_v24 = vshrl.u32 (!%p239_p2), %v297_v22, 7 }
   0x9   : > { %v415_v8 = vld [vmem:[%s2836_s4] sm:$0xf] (!%p239_p2)  ;;  %v2093_v15 = vld [vmem:[%s2834_s2 + $0x4] sm:$0xf] (!%p239_p2)  ;;  %v2100_v16 = vld [vmem:[%s2835_s3 + $0x8] sm:$0xf] (!%p239_p2) }
   0xa   : > { %v539_v9 = vld [vmem:[%s2838_s6] sm:$0xff] (!%p239_p2)  ;;  %v2103_v19 = vld [vmem:[%s2838_s6 + $0x10] sm:$0xff] (!%p239_p2)  ;;  %v2393_v20 = vld [vmem:[%s2833_s1 + $0xc] sm:$0xf] (!%p239_p2)  ;;  %v2432_v26 = vsub.s32 (!%p239_p2), 2, %v2416_v24  ;;  %v2438_v28 = vsub.s32 (!%p239_p2), 0, %v2416_v24 }
   0xb   : > { %2127 = vset.pattern.permute.xlu1 (!%p239_p2), %v2254_v3  ;;  %2125 = vset.pattern.permute.xlu0 (!%p239_p2), %v2255_v4  ;;  %v2095_v18 = vld [vmem:[%s2836_s4 + $0x4] sm:$0xf] (!%p239_p2)  ;;  %v2099_v21 = vld [vmem:[%s2834_s2 + $0x8] sm:$0xf] (!%p239_p2)  ;;  %v2411_v23 = vld [vmem:[%s2835_s3 + $0xc] sm:$0xf] (!%p239_p2) }
   0xc   : > { %374 = vperm.xlu1 (!%p239_p2), %2127, %v290_v0   ;;  %318 = vperm.xlu0 (!%p239_p2), %2125, %v290_v0   ;;  %v2101_v25 = vld [vmem:[%s2836_s4 + $0x8] sm:$0xf] (!%p239_p2)  ;;  %v2441_v29 = vsub.s32 (!%p239_p2), 1, %v2416_v24  ;;  %v2445_v32 = vsub.s32 (!%p239_p2), 3, %v2416_v24  ;;  %v2478_v45 = vld [vmem:[%s2837_s5 + $0x18] sm:$0xff] (!%p239_p2)  ;;  %vm1136_vm0 = vcmask (!%p239_p2), 1040384  }
   0xd   : > { %s2841_s18 = smov (!%p271_p3, %s2088_s18), 7  ;;  %vm1141_vm1 = vcmask 1041408   ;;  %vm1146_vm2 = vcmask 1042432  }
   0xe   : > { %s2089_s25 = sshll.u32 %s2841_s18, 3 }
   0xf   : > { %s2427_s27 = scalar_lea.vmem %s2832_s0, %s2089_s25  ;;  %s2766_s15 = scalar_lea.vmem %s2839_s7, %s2089_s25 }
  0x10   : > { %2128 = vset.pattern.permute.xlu1 %v2253_v2  ;;  %2129 = vset.pattern.permute.xlu0 %v2253_v2  ;;  %v2435_v27 = vld [vmem:[%s2427_s27] sm:$0xf]  ;;  %v2449_v33 = vld [vmem:[%s2427_s27 + $0x8] sm:$0xf]  ;;  %v2452_v34 = vld [vmem:[%s2427_s27 + $0x10] sm:$0xf] }
  0x11   : > { %403 = vperm.xlu1 %2128, %v291_v5   ;;  %418 = vperm.xlu0 %2129, %v414_v6   ;;  %v2455_v35 = vld [vmem:[%s2427_s27 + $0x18] sm:$0xf]  ;;  %v352_v36 = vrot.slane %v2435_v27, %v2432_v26  ;;  %v300_v37 = vrot.slane %v2435_v27, %v2438_v28  ;;  %v304_v38 = vrot.slane %v2449_v33, %v2438_v28 }
  0x12   : > { %v308_v39 = vrot.slane %v2452_v34, %v2438_v28  ;;  %v312_v40 = vrot.slane %v2455_v35, %v2438_v28  ;;  %v324_v41 = vrot.slane %v2435_v27, %v2441_v29  ;;  %v328_v42 = vrot.slane %v2449_v33, %v2441_v29 }
  0x13   : > { %v332_v43 = vrot.slane %v2452_v34, %v2441_v29  ;;  %v336_v44 = vrot.slane %v2455_v35, %v2441_v29  ;;  %v356_v46 = vrot.slane %v2449_v33, %v2432_v26  ;;  %v360_v47 = vrot.slane %v2452_v34, %v2432_v26 }
  0x14   : > { %v364_v48 = vrot.slane %v2455_v35, %v2432_v26  ;;  %v380_v50 = vrot.slane %v2435_v27, %v2445_v32  ;;  %v384_v51 = vrot.slane %v2449_v33, %v2445_v32  ;;  %v388_v52 = vrot.slane %v2452_v34, %v2445_v32 }
  0x15   : > { %2130 = vset.pattern.permute.xlu1 %v2255_v4  ;;  %2132 = vset.pattern.permute.xlu0 %v2254_v3  ;;  %v392_v53 = vrot.slane %v2455_v35, %v2445_v32 }
  0x16   : > { %442 = vperm.xlu1 %2130, %v414_v6   ;;  %498 = vperm.xlu0 %2132, %v414_v6  }
  0x1a   : > { %2131 = vset.pattern.permute.xlu1 %v2252_v1  ;;  %2134 = vset.pattern.permute.xlu0 %v2255_v4 }
  0x1b   : > { %470 = vperm.xlu1 %2131, %v414_v6   ;;  %566 = vperm.xlu0 %2134, %v538_v7  }
  0x1f   : > { %2133 = vset.pattern.permute.xlu1 %v2253_v2  ;;  %2137 = vset.pattern.permute.xlu0 %v2253_v2 }
  0x20   : > { %527 = vperm.xlu1 %2133, %v415_v8   ;;  %651 = vperm.xlu0 %2137, %v539_v9  }
  0x24   : > { %542 = vperm.xlu1 %2133, %v538_v7   ;;  %2140 = vset.pattern.permute.xlu0 %v2252_v1 }
  0x25   : > { %752 = vperm.xlu0 %2140, %v2092_v10  }
  0x28   : > { %2135 = vset.pattern.permute.xlu1 %v2252_v1 }
  0x29   : > { %594 = vperm.xlu1 %2135, %v538_v7   ;;  %2143 = vset.pattern.permute.xlu0 %v2253_v2 }
  0x2a   : > { %826 = vperm.xlu0 %2143, %v2094_v11  }
  0x2d   : > { %2136 = vset.pattern.permute.xlu1 %v2254_v3 }
  0x2e   : > { %622 = vperm.xlu1 %2136, %v538_v7   ;;  %2146 = vset.pattern.permute.xlu0 %v2254_v3 }
  0x2f   : > { %906 = vperm.xlu0 %2146, %v2094_v11  }
  0x32   : > { %2138 = vset.pattern.permute.xlu1 %v2253_v2 }
  0x33   : > { %700 = vperm.xlu1 %2138, %v2092_v10   ;;  %2148 = vset.pattern.permute.xlu0 %v2255_v4 }
  0x34   : > { %976 = vperm.xlu0 %2148, %v2096_v12  }
  0x37   : > { %2139 = vset.pattern.permute.xlu1 %v2255_v4 }
  0x38   : > { %724 = vperm.xlu1 %2139, %v2092_v10   ;;  %2151 = vset.pattern.permute.xlu0 %v2253_v2 }
  0x39   : > { %1061 = vperm.xlu0 %2151, %v2097_v13  }
  0x3c   : > { %2141 = vset.pattern.permute.xlu1 %v2254_v3 }
  0x3d   : > { %780 = vperm.xlu1 %2141, %v2092_v10   ;;  %2154 = vset.pattern.permute.xlu0 %v2252_v1 }
  0x3e   : > { %1245 = vperm.xlu0 %2154, %v2098_v14  }
  0x41   : > { %2142 = vset.pattern.permute.xlu1 %v2253_v2 }
  0x42   : > { %809 = vperm.xlu1 %2142, %v2093_v15   ;;  %2157 = vset.pattern.permute.xlu0 %v2253_v2 }
  0x43   : > { %1319 = vperm.xlu0 %2157, %v2100_v16  }
  0x46   : > { %2144 = vset.pattern.permute.xlu1 %v2255_v4 }
  0x47   : > { %850 = vperm.xlu1 %2144, %v2094_v11   ;;  %2160 = vset.pattern.permute.xlu0 %v2254_v3 }
  0x48   : > { %1399 = vperm.xlu0 %2160, %v2100_v16  }
  0x4b   : > { %2145 = vset.pattern.permute.xlu1 %v2252_v1 }
  0x4c   : > { %878 = vperm.xlu1 %2145, %v2094_v11   ;;  %2162 = vset.pattern.permute.xlu0 %v2255_v4 }
  0x4d   : > { %1469 = vperm.xlu0 %2162, %v2374_v17  }
  0x50   : > { %2147 = vset.pattern.permute.xlu1 %v2253_v2 }
  0x51   : > { %935 = vperm.xlu1 %2147, %v2095_v18   ;;  %2165 = vset.pattern.permute.xlu0 %v2253_v2 }
  0x52   : > { %1554 = vperm.xlu0 %2165, %v2103_v19  }
  0x55   : > { %952 = vperm.xlu1 %2147, %v2096_v12  }
  0x56   : > { %2168 = vset.pattern.permute.xlu0 %v2252_v1 }
  0x57   : > { %1655 = vperm.xlu0 %2168, %v2393_v20  }
  0x59   : > { %2149 = vset.pattern.permute.xlu1 %v2252_v1 }
  0x5a   : > { %1004 = vperm.xlu1 %2149, %v2096_v12  }
  0x5b   : > { %2171 = vset.pattern.permute.xlu0 %v2253_v2 }
  0x5c   : > { %1729 = vperm.xlu0 %2171, %v2411_v23  }
  0x5e   : > { %2150 = vset.pattern.permute.xlu1 %v2254_v3 }
  0x5f   : > { %1032 = vperm.xlu1 %2150, %v2096_v12  }
  0x60   : > { %2174 = vset.pattern.permute.xlu0 %v2254_v3 }
  0x61   : > { %1809 = vperm.xlu0 %2174, %v2411_v23  }
  0x63   : > { %2152 = vset.pattern.permute.xlu1 %v2253_v2 }
  0x64   : > { %1193 = vperm.xlu1 %2152, %v2098_v14  }
  0x65   : > { %2176 = vset.pattern.permute.xlu0 %v2255_v4 }
  0x66   : > { %1879 = vperm.xlu0 %2176, %v2478_v45  }
  0x68   : > { %2153 = vset.pattern.permute.xlu1 %v2255_v4 }
  0x69   : > { %1217 = vperm.xlu1 %2153, %v2098_v14  }
  0x6a   : > { %2179 = vset.pattern.permute.xlu0 %v2253_v2 }
  0x6d   : > { %2155 = vset.pattern.permute.xlu1 %v2254_v3 }
  0x6e   : > { %1273 = vperm.xlu1 %2155, %v2098_v14  }
  0x72   : > { %2156 = vset.pattern.permute.xlu1 %v2253_v2 }
  0x73   : > { %1302 = vperm.xlu1 %2156, %v2099_v21  }
  0x77   : > { %2158 = vset.pattern.permute.xlu1 %v2255_v4 }
  0x78   : > { %1343 = vperm.xlu1 %2158, %v2100_v16  }
  0x7c   : > { %2159 = vset.pattern.permute.xlu1 %v2252_v1 }
  0x7d   : > { %1371 = vperm.xlu1 %2159, %v2100_v16  }
  0x81   : > { %2161 = vset.pattern.permute.xlu1 %v2253_v2 }
  0x82   : > { %1428 = vperm.xlu1 %2161, %v2101_v25  }
  0x86   : > { %v347_v30 = vpop.permute.xlu1 %346  ;;  %v295_v31 = vpop.permute.xlu0 %294  ;;  %1445 = vperm.xlu1 %2161, %v2374_v17  }
  0x87   : > { %v313_v55 = vmul.f32 %v300_v37, %v295_v31  ;;  %v314_v56 = vmul.f32 %v304_v38, %v295_v31  ;;  %v315_v57 = vmul.f32 %v308_v39, %v295_v31  ;;  %v316_v58 = vmul.f32 %v312_v40, %v295_v31 }
  0x88   : > { %v365_v63 = vmul.f32 %v352_v36, %v347_v30  ;;  %v366_v0 = vmul.f32 %v356_v46, %v347_v30  ;;  %v367_v5 = vmul.f32 %v360_v47, %v347_v30  ;;  %v368_v6 = vmul.f32 %v364_v48, %v347_v30 }
  0x8a   : > { %2163 = vset.pattern.permute.xlu1 %v2252_v1 }
  0x8b   : > { %v375_v49 = vpop.permute.xlu1 %374  ;;  %v319_v54 = vpop.permute.xlu0 %318  ;;  %1497 = vperm.xlu1 %2163, %v2374_v17  }
  0x8c   : > { %v337_v59 = vmul.f32 %v324_v41, %v319_v54  ;;  %v338_v60 = vmul.f32 %v328_v42, %v319_v54  ;;  %v339_v61 = vmul.f32 %v332_v43, %v319_v54  ;;  %v340_v62 = vmul.f32 %v336_v44, %v319_v54 }
  0x8d   : > { %v393_v11 = vmul.f32 %v380_v50, %v375_v49  ;;  %v394_v12 = vmul.f32 %v384_v51, %v375_v49  ;;  %v395_v13 = vmul.f32 %v388_v52, %v375_v49  ;;  %v396_v14 = vmul.f32 %v392_v53, %v375_v49 }
  0x8e   : > { %v341_v7 = vadd.f32 %v337_v59, %v313_v55  ;;  %v342_v8 = vadd.f32 %v338_v60, %v314_v56  ;;  %v343_v9 = vadd.f32 %v339_v61, %v315_v57  ;;  %v344_v10 = vadd.f32 %v340_v62, %v316_v58 }
  0x8f   : > { %2164 = vset.pattern.permute.xlu1 %v2254_v3 }
  0x90   : > { %v404_v15 = vpop.permute.xlu1 %403  ;;  %1525 = vperm.xlu1 %2164, %v2374_v17   ;;  %v369_v16 = vadd.f32 %v365_v63, %v341_v7  ;;  %v370_v18 = vadd.f32 %v366_v0, %v342_v8  ;;  %v371_v19 = vadd.f32 %v367_v5, %v343_v9  ;;  %v372_v21 = vadd.f32 %v368_v6, %v344_v10  ;;  %v419_v49 = vpop.permute.xlu0 %418 }
  0x92   : > { %v397_v22 = vadd.f32 %v393_v11, %v369_v16  ;;  %v398_v25 = vadd.f32 %v394_v12, %v370_v18  ;;  %v399_v30 = vadd.f32 %v395_v13, %v371_v19  ;;  %v400_v31 = vadd.f32 %v396_v14, %v372_v21  ;;  %v2105_v18 = vld [vmem:[%s2834_s2 + $0xc] sm:$0xf] }
  0x94   : > { %2166 = vset.pattern.permute.xlu1 %v2253_v2  ;;  %v406_v36 = vadd.f32 %v404_v15, %v397_v22  ;;  %v407_v37 = vadd.f32 %v404_v15, %v398_v25  ;;  %v408_v38 = vadd.f32 %v404_v15, %v399_v30  ;;  %v409_v39 = vadd.f32 %v404_v15, %v400_v31 }
  0x95   : > { %v443_v40 = vpop.permute.xlu1 %442  ;;  %1603 = vperm.xlu1 %2166, %v2393_v20   ;;  %v499_v11 = vpop.permute.xlu0 %498 }
  0x96   : > { %v410_v41 = vmax.f32 %v406_v36, 0.0  ;;  %v411_v42 = vmax.f32 %v407_v37, 0.0  ;;  %v412_v17 = vmax.f32 %v408_v38, 0.0  ;;  %v413_v43 = vmax.f32 %v409_v39, 0.0  ;;  %v2109_v37 = vld [vmem:[%s2838_s6 + $0x18] sm:$0xff] }
  0x97   : > { %1964 = vperm.xlu0 %2179, %v2109_v37  }
  0x98   : > { %v448_v44 = vrot.slane %v410_v41, %v2441_v29  ;;  %v452_v46 = vrot.slane %v411_v42, %v2441_v29  ;;  %v456_v47 = vrot.slane %v412_v17, %v2441_v29  ;;  %v460_v48 = vrot.slane %v413_v43, %v2441_v29 }
  0x99   : > { %2167 = vset.pattern.permute.xlu1 %v2255_v4  ;;  %v424_v50 = vrot.slane %v410_v41, %v2438_v28  ;;  %v428_v51 = vrot.slane %v411_v42, %v2438_v28  ;;  %v432_v52 = vrot.slane %v412_v17, %v2438_v28  ;;  %v436_v53 = vrot.slane %v413_v43, %v2438_v28 }
  0x9a   : > { %v471_v54 = vpop.permute.xlu1 %470  ;;  %1627 = vperm.xlu1 %2167, %v2393_v20   ;;  %v461_v55 = vmul.f32 %v448_v44, %v443_v40  ;;  %v462_v56 = vmul.f32 %v452_v46, %v443_v40  ;;  %v463_v57 = vmul.f32 %v456_v47, %v443_v40  ;;  %v464_v58 = vmul.f32 %v460_v48, %v443_v40 }
  0x9b   : > { %v437_v59 = vmul.f32 %v424_v50, %v419_v49  ;;  %v438_v60 = vmul.f32 %v428_v51, %v419_v49  ;;  %v439_v61 = vmul.f32 %v432_v52, %v419_v49  ;;  %v440_v62 = vmul.f32 %v436_v53, %v419_v49 }
  0x9c   : > { %v504_v63 = vrot.slane %v410_v41, %v2445_v32  ;;  %v508_v0 = vrot.slane %v411_v42, %v2445_v32  ;;  %v512_v5 = vrot.slane %v412_v17, %v2445_v32  ;;  %v516_v6 = vrot.slane %v413_v43, %v2445_v32 }
  0x9d   : > { %v465_v7 = vadd.f32 %v461_v55, %v437_v59  ;;  %v466_v8 = vadd.f32 %v462_v56, %v438_v60  ;;  %v467_v9 = vadd.f32 %v463_v57, %v439_v61  ;;  %v468_v10 = vadd.f32 %v464_v58, %v440_v62  ;;  %v567_v59 = vpop.permute.xlu0 %566 }
  0x9e   : > { %2169 = vset.pattern.permute.xlu1 %v2254_v3  ;;  %v476_v12 = vrot.slane %v410_v41, %v2432_v26  ;;  %v480_v13 = vrot.slane %v411_v42, %v2432_v26  ;;  %v484_v14 = vrot.slane %v412_v17, %v2432_v26  ;;  %v488_v15 = vrot.slane %v413_v43, %v2432_v26 }
  0x9f   : > { %1683 = vperm.xlu1 %2169, %v2393_v20   ;;  %v528_v16 = vpop.permute.xlu1 %527  ;;  %v517_v30 = vmul.f32 %v504_v63, %v499_v11  ;;  %v518_v20 = vmul.f32 %v508_v0, %v499_v11  ;;  %v519_v31 = vmul.f32 %v512_v5, %v499_v11  ;;  %v520_v36 = vmul.f32 %v516_v6, %v499_v11 }
  0xa0   : > { %v489_v19 = vmul.f32 %v476_v12, %v471_v54  ;;  %v490_v21 = vmul.f32 %v480_v13, %v471_v54  ;;  %v491_v22 = vmul.f32 %v484_v14, %v471_v54  ;;  %v492_v25 = vmul.f32 %v488_v15, %v471_v54 }
  0xa2   : > { %v493_v38 = vadd.f32 %v489_v19, %v465_v7  ;;  %v494_v39 = vadd.f32 %v490_v21, %v466_v8  ;;  %v495_v40 = vadd.f32 %v491_v22, %v467_v9  ;;  %v496_v41 = vadd.f32 %v492_v25, %v468_v10 }
  0xa3   : > { %2170 = vset.pattern.permute.xlu1 %v2253_v2  ;;  %v543_v46 = vpop.permute.xlu1 %542 }
  0xa4   : > { %1712 = vperm.xlu1 %2170, %v2105_v18   ;;  %v521_v42 = vadd.f32 %v517_v30, %v493_v38  ;;  %v522_v17 = vadd.f32 %v518_v20, %v494_v39  ;;  %v523_v43 = vadd.f32 %v519_v31, %v495_v40  ;;  %v524_v44 = vadd.f32 %v520_v36, %v496_v41 }
  0xa6   : > { %v530_v47 = vadd.f32 %v528_v16, %v521_v42  ;;  %v531_v48 = vadd.f32 %v528_v16, %v522_v17  ;;  %v532_v49 = vadd.f32 %v528_v16, %v523_v43  ;;  %v533_v50 = vadd.f32 %v528_v16, %v524_v44  ;;  %v2107_v16 = vld [vmem:[%s2836_s4 + $0xc] sm:$0xf] }
  0xa8   : > { %2172 = vset.pattern.permute.xlu1 %v2255_v4  ;;  %v534_v51 = vmax.f32 %v530_v47, 0.0  ;;  %v535_v52 = vmax.f32 %v531_v48, 0.0  ;;  %v536_v53 = vmax.f32 %v532_v49, 0.0  ;;  %v537_v54 = vmax.f32 %v533_v50, 0.0  ;;  %v595_v60 = vpop.permute.xlu1 %594  ;;  %v652_v48 = vpop.permute.xlu0 %651 }
  0xa9   : > { %1753 = vperm.xlu1 %2172, %v2411_v23  }
  0xaa   : > { %v548_v55 = vrot.slane %v534_v51, %v2438_v28  ;;  %v552_v56 = vrot.slane %v535_v52, %v2438_v28  ;;  %v556_v57 = vrot.slane %v536_v53, %v2438_v28  ;;  %v560_v58 = vrot.slane %v537_v54, %v2438_v28 }
  0xab   : > { %v572_v61 = vrot.slane %v534_v51, %v2441_v29  ;;  %v576_v4 = vrot.slane %v535_v52, %v2441_v29  ;;  %v580_v62 = vrot.slane %v536_v53, %v2441_v29  ;;  %v584_v63 = vrot.slane %v537_v54, %v2441_v29 }
  0xac   : > { %v561_v0 = vmul.f32 %v548_v55, %v543_v46  ;;  %v562_v5 = vmul.f32 %v552_v56, %v543_v46  ;;  %v563_v6 = vmul.f32 %v556_v57, %v543_v46  ;;  %v564_v7 = vmul.f32 %v560_v58, %v543_v46 }
  0xad   : > { %2173 = vset.pattern.permute.xlu1 %v2252_v1  ;;  %v585_v8 = vmul.f32 %v572_v61, %v567_v59  ;;  %v586_v9 = vmul.f32 %v576_v4, %v567_v59  ;;  %v587_v10 = vmul.f32 %v580_v62, %v567_v59  ;;  %v588_v11 = vmul.f32 %v584_v63, %v567_v59  ;;  %v623_v31 = vpop.permute.xlu1 %622 }
  0xae   : > { %1781 = vperm.xlu1 %2173, %v2411_v23   ;;  %v600_v12 = vrot.slane %v534_v51, %v2432_v26  ;;  %v604_v13 = vrot.slane %v535_v52, %v2432_v26  ;;  %v608_v14 = vrot.slane %v536_v53, %v2432_v26  ;;  %v612_v15 = vrot.slane %v537_v54, %v2432_v26 }
  0xaf   : > { %v589_v18 = vadd.f32 %v585_v8, %v561_v0  ;;  %v590_v19 = vadd.f32 %v586_v9, %v562_v5  ;;  %v591_v21 = vadd.f32 %v587_v10, %v563_v6  ;;  %v592_v23 = vadd.f32 %v588_v11, %v564_v7  ;;  %v286_v6 = vld [vmem:[%s2427_s27] sm:$0xf0]  ;;  %v287_v8 = vld [vmem:[%s2427_s27 + $0x8] sm:$0xf0]  ;;  %v288_v11 = vld [vmem:[%s2427_s27 + $0x10] sm:$0xf0] }
  0xb0   : > { %v613_v22 = vmul.f32 %v600_v12, %v595_v60  ;;  %v614_v25 = vmul.f32 %v604_v13, %v595_v60  ;;  %v615_v30 = vmul.f32 %v608_v14, %v595_v60  ;;  %v616_v20 = vmul.f32 %v612_v15, %v595_v60  ;;  %v289_v14 = vld [vmem:[%s2427_s27 + $0x18] sm:$0xf0] }
  0xb1   : > { %v628_v36 = vrot.slane %v534_v51, %v2445_v32  ;;  %v632_v37 = vrot.slane %v535_v52, %v2445_v32  ;;  %v636_v38 = vrot.slane %v536_v53, %v2445_v32  ;;  %v640_v39 = vrot.slane %v537_v54, %v2445_v32 }
  0xb2   : > { %2175 = vset.pattern.permute.xlu1 %v2253_v2  ;;  %v617_v40 = vadd.f32 %v613_v22, %v589_v18  ;;  %v618_v41 = vadd.f32 %v614_v25, %v590_v19  ;;  %v619_v42 = vadd.f32 %v615_v30, %v591_v21  ;;  %v620_v17 = vadd.f32 %v616_v20, %v592_v23 }
  0xb3   : > { %1838 = vperm.xlu1 %2175, %v2107_v16   ;;  %v641_v43 = vmul.f32 %v628_v36, %v623_v31  ;;  %v642_v44 = vmul.f32 %v632_v37, %v623_v31  ;;  %v643_v46 = vmul.f32 %v636_v38, %v623_v31  ;;  %v644_v47 = vmul.f32 %v640_v39, %v623_v31 }
  0xb4   : > { %v705_v18 = vsub.s32 4, %v2416_v24  ;;  %v729_v19 = vsub.s32 5, %v2416_v24  ;;  %v785_v39 = vsub.s32 7, %v2416_v24 }
  0xb5   : > { %v645_v49 = vadd.f32 %v641_v43, %v617_v40  ;;  %v646_v2 = vadd.f32 %v642_v44, %v618_v41  ;;  %v647_v50 = vadd.f32 %v643_v46, %v619_v42  ;;  %v648_v51 = vadd.f32 %v644_v47, %v620_v17 }
  0xb6   : > { %v757_v17 = vsub.s32 6, %v2416_v24 }
  0xb7   : > { %1855 = vperm.xlu1 %2175, %v2478_v45   ;;  %v654_v52 = vadd.f32 %v652_v48, %v645_v49  ;;  %v655_v53 = vadd.f32 %v652_v48, %v646_v2  ;;  %v656_v55 = vadd.f32 %v652_v48, %v647_v50  ;;  %v657_v54 = vadd.f32 %v652_v48, %v648_v51 }
  0xb9   : > { %2180 = vtanh.f32 %v654_v52 }
  0xba   : > { %2182 = vtanh.f32 %v655_v53 }
  0xbb   : > { %2177 = vset.pattern.permute.xlu1 %v2252_v1  ;;  %2184 = vtanh.f32 %v656_v55 }
  0xbc   : > { %1907 = vperm.xlu1 %2177, %v2478_v45   ;;  %2186 = vtanh.f32 %v657_v54 }
  0xc0   : > { %2178 = vset.pattern.permute.xlu1 %v2254_v3 }
  0xc1   : > { %1935 = vperm.xlu1 %2178, %v2478_v45   ;;  %v701_v45 = vpop.permute.xlu1 %700 }
  0xc3   : > { %v2181_v56 = vpop.eup %2180 }
  0xc4   : > { %v2183_v57 = vpop.eup %2182  ;;  %v662_v58 = vmul.f32 0.1, %v2181_v56 }
  0xc5   : > { %v2185_v59 = vpop.eup %2184  ;;  %v663_v60 = vmul.f32 0.1, %v2183_v57  ;;  %v725_v30 = vpop.permute.xlu1 %724 }
  0xc6   : > { %v2187_v61 = vpop.eup %2186  ;;  %v664_v4 = vmul.f32 0.1, %v2185_v59  ;;  %v666_v62 = vmul.f32 1.442695, %v662_v58  ;;  %v753_v59 = vpop.permute.xlu0 %752 }
  0xc7   : > { %v665_v1 = vmul.f32 0.1, %v2187_v61  ;;  %v668_v63 = vmul.f32 1.442695, %v663_v60 }
  0xc8   : > { %2188 = vpow2.f32 %v666_v62  ;;  %v670_v0 = vmul.f32 1.442695, %v664_v4 }
  0xc9   : > { %2190 = vpow2.f32 %v668_v63  ;;  %v672_v3 = vmul.f32 1.442695, %v665_v1 }
  0xca   : > { %2192 = vpow2.f32 %v670_v0 }
  0xcb   : > { %2194 = vpow2.f32 %v672_v3 }
  0xd2   : > { %v2189_v5 = vpop.eup %2188 }
  0xd3   : > { %v2191_v7 = vpop.eup %2190  ;;  %v678_v9 = vrot.slane %v2189_v5, 4 }
  0xd4   : > { %v2193_v10 = vpop.eup %2192  ;;  %v679_v12 = vrot.slane %v2191_v7, 4 }
  0xd5   : > { %v2195_v13 = vpop.eup %2194  ;;  %v680_v15 = vrot.slane %v2193_v10, 4  ;;  %v686_v16 = vmul.f32 %v678_v9, %v286_v6 }
  0xd6   : > { %v681_v21 = vrot.slane %v2195_v13, 4  ;;  %v687_v23 = vmul.f32 %v679_v12, %v287_v8 }
  0xd7   : > { %v688_v22 = vmul.f32 %v680_v15, %v288_v11  ;;  %v2564_v25 = vadd.f32 %v686_v16, %v654_v52 }
  0xd8   : > { %v689_v20 = vmul.f32 %v681_v21, %v289_v14  ;;  %v2566_v31 = vadd.f32 %v687_v23, %v655_v53  ;;  %v781_v53 = vpop.permute.xlu1 %780 }
  0xd9   : > { %v2568_v36 = vadd.f32 %v688_v22, %v656_v55  ;;  %v706_v37 = vrot.slane %v2564_v25, %v705_v18  ;;  %v730_v38 = vrot.slane %v2564_v25, %v729_v19  ;;  %v786_v24 = vrot.slane %v2564_v25, %v785_v39 }
  0xda   : > { %v2573_v40 = vadd.f32 %v689_v20, %v657_v54  ;;  %v710_v41 = vrot.slane %v2566_v31, %v705_v18  ;;  %v734_v42 = vrot.slane %v2566_v31, %v729_v19  ;;  %v790_v57 = vrot.slane %v2566_v31, %v785_v39 }
  0xdb   : > { %v714_v43 = vrot.slane %v2568_v36, %v705_v18  ;;  %v719_v44 = vmul.f32 %v706_v37, %v701_v45  ;;  %v738_v46 = vrot.slane %v2568_v36, %v729_v19  ;;  %v743_v47 = vmul.f32 %v730_v38, %v725_v30 }
  0xdc   : > { %v718_v48 = vrot.slane %v2573_v40, %v705_v18  ;;  %v720_v49 = vmul.f32 %v710_v41, %v701_v45  ;;  %v742_v2 = vrot.slane %v2573_v40, %v729_v19  ;;  %v744_v50 = vmul.f32 %v734_v42, %v725_v30  ;;  %v810_v8 = vpop.permute.xlu1 %809 }
  0xdd   : > { %v721_v51 = vmul.f32 %v714_v43, %v701_v45  ;;  %v745_v52 = vmul.f32 %v738_v46, %v725_v30  ;;  %v747_v56 = vadd.f32 %v743_v47, %v719_v44  ;;  %v794_v58 = vrot.slane %v2568_v36, %v785_v39  ;;  %v827_v46 = vpop.permute.xlu0 %826 }
  0xde   : > { %v722_v55 = vmul.f32 %v718_v48, %v701_v45  ;;  %v746_v54 = vmul.f32 %v742_v2, %v725_v30  ;;  %v748_v60 = vadd.f32 %v744_v50, %v720_v49  ;;  %v798_v61 = vrot.slane %v2573_v40, %v785_v39 }
  0xdf   : > { %v758_v4 = vrot.slane %v2564_v25, %v757_v17  ;;  %v762_v62 = vrot.slane %v2566_v31, %v757_v17  ;;  %v749_v1 = vadd.f32 %v745_v52, %v721_v51  ;;  %v766_v0 = vrot.slane %v2568_v36, %v757_v17 }
  0xe0   : > { %v750_v63 = vadd.f32 %v746_v54, %v722_v55  ;;  %v770_v3 = vrot.slane %v2573_v40, %v757_v17  ;;  %v799_v9 = vmul.f32 %v786_v24, %v781_v53  ;;  %v800_v10 = vmul.f32 %v790_v57, %v781_v53  ;;  %v851_v38 = vpop.permute.xlu1 %850 }
  0xe1   : > { %v771_v45 = vmul.f32 %v758_v4, %v753_v59  ;;  %v772_v5 = vmul.f32 %v762_v62, %v753_v59  ;;  %v773_v6 = vmul.f32 %v766_v0, %v753_v59  ;;  %v801_v13 = vmul.f32 %v794_v58, %v781_v53 }
  0xe2   : > { %v774_v7 = vmul.f32 %v770_v3, %v753_v59  ;;  %v802_v14 = vmul.f32 %v798_v61, %v781_v53 }
  0xe3   : > { %v775_v11 = vadd.f32 %v771_v45, %v747_v56  ;;  %v776_v12 = vadd.f32 %v772_v5, %v748_v60  ;;  %v777_v15 = vadd.f32 %v773_v6, %v749_v1  ;;  %v907_v45 = vpop.permute.xlu0 %906 }
  0xe4   : > { %v778_v16 = vadd.f32 %v774_v7, %v750_v63  ;;  %v879_v56 = vpop.permute.xlu1 %878 }
  0xe5   : > { %v803_v18 = vadd.f32 %v799_v9, %v775_v11  ;;  %v804_v19 = vadd.f32 %v800_v10, %v776_v12  ;;  %v805_v21 = vadd.f32 %v801_v13, %v777_v15 }
  0xe6   : > { %v806_v23 = vadd.f32 %v802_v14, %v778_v16 }
  0xe7   : > { %v812_v22 = vadd.f32 %v810_v8, %v803_v18  ;;  %v813_v30 = vadd.f32 %v810_v8, %v804_v19  ;;  %v814_v20 = vadd.f32 %v810_v8, %v805_v21 }
  0xe8   : > { %v815_v37 = vadd.f32 %v810_v8, %v806_v23  ;;  %v936_v13 = vpop.permute.xlu1 %935 }
  0xe9   : > { %v816_v39 = vmax.f32 %v812_v22, 0.0  ;;  %v817_v41 = vmax.f32 %v813_v30, 0.0  ;;  %v818_v42 = vmax.f32 %v814_v20, 0.0 }
  0xea   : > { %v819_v17 = vmax.f32 %v815_v37, 0.0 }
  0xeb   : > { %v856_v43 = vrot.slane %v816_v39, %v2441_v29  ;;  %v860_v44 = vrot.slane %v817_v41, %v2441_v29  ;;  %v864_v47 = vrot.slane %v818_v42, %v2441_v29  ;;  %v884_v49 = vrot.slane %v816_v39, %v2432_v26 }
  0xec   : > { %v868_v48 = vrot.slane %v819_v17, %v2441_v29  ;;  %v888_v2 = vrot.slane %v817_v41, %v2432_v26  ;;  %v892_v50 = vrot.slane %v818_v42, %v2432_v26  ;;  %v896_v51 = vrot.slane %v819_v17, %v2432_v26 }
  0xed   : > { %v869_v52 = vmul.f32 %v856_v43, %v851_v38  ;;  %v870_v53 = vmul.f32 %v860_v44, %v851_v38  ;;  %v871_v55 = vmul.f32 %v864_v47, %v851_v38  ;;  %v832_v24 = vrot.slane %v816_v39, %v2438_v28  ;;  %v953_v43 = vpop.permute.xlu1 %952 }
  0xee   : > { %v872_v54 = vmul.f32 %v868_v48, %v851_v38  ;;  %v836_v57 = vrot.slane %v817_v41, %v2438_v28  ;;  %v840_v58 = vrot.slane %v818_v42, %v2438_v28  ;;  %v844_v59 = vrot.slane %v819_v17, %v2438_v28 }
  0xef   : > { %v912_v60 = vrot.slane %v816_v39, %v2445_v32  ;;  %v916_v61 = vrot.slane %v817_v41, %v2445_v32  ;;  %v920_v4 = vrot.slane %v818_v42, %v2445_v32  ;;  %v924_v62 = vrot.slane %v819_v17, %v2445_v32 }
  0xf0   : > { %v845_v1 = vmul.f32 %v832_v24, %v827_v46  ;;  %v846_v63 = vmul.f32 %v836_v57, %v827_v46  ;;  %v847_v0 = vmul.f32 %v840_v58, %v827_v46  ;;  %v848_v3 = vmul.f32 %v844_v59, %v827_v46 }
  0xf1   : > { %v897_v5 = vmul.f32 %v884_v49, %v879_v56  ;;  %v898_v6 = vmul.f32 %v888_v2, %v879_v56  ;;  %v899_v7 = vmul.f32 %v892_v50, %v879_v56  ;;  %v900_v8 = vmul.f32 %v896_v51, %v879_v56 }
  0xf2   : > { %v873_v9 = vadd.f32 %v869_v52, %v845_v1  ;;  %v874_v10 = vadd.f32 %v870_v53, %v846_v63  ;;  %v875_v11 = vadd.f32 %v871_v55, %v847_v0  ;;  %v876_v12 = vadd.f32 %v872_v54, %v848_v3  ;;  %v1005_v52 = vpop.permute.xlu1 %1004 }
  0xf3   : > { %v925_v14 = vmul.f32 %v912_v60, %v907_v45  ;;  %v926_v15 = vmul.f32 %v916_v61, %v907_v45  ;;  %v927_v16 = vmul.f32 %v920_v4, %v907_v45  ;;  %v928_v18 = vmul.f32 %v924_v62, %v907_v45  ;;  %v977_v60 = vpop.permute.xlu0 %976 }
  0xf4   : > { %v901_v19 = vadd.f32 %v897_v5, %v873_v9  ;;  %v902_v21 = vadd.f32 %v898_v6, %v874_v10  ;;  %v903_v23 = vadd.f32 %v899_v7, %v875_v11  ;;  %v904_v22 = vadd.f32 %v900_v8, %v876_v12 }
  0xf6   : > { %v929_v30 = vadd.f32 %v925_v14, %v901_v19  ;;  %v930_v20 = vadd.f32 %v926_v15, %v902_v21  ;;  %v931_v37 = vadd.f32 %v927_v16, %v903_v23  ;;  %v932_v38 = vadd.f32 %v928_v18, %v904_v22  ;;  %v1033_v5 = vpop.permute.xlu1 %1032 }
  0xf8   : > { %v938_v39 = vadd.f32 %v936_v13, %v929_v30  ;;  %v939_v41 = vadd.f32 %v936_v13, %v930_v20  ;;  %v940_v42 = vadd.f32 %v936_v13, %v931_v37  ;;  %v941_v17 = vadd.f32 %v936_v13, %v932_v38 }
  0xfa   : > { %v942_v44 = vmax.f32 %v938_v39, 0.0  ;;  %v943_v46 = vmax.f32 %v939_v41, 0.0  ;;  %v944_v47 = vmax.f32 %v940_v42, 0.0  ;;  %v945_v48 = vmax.f32 %v941_v17, 0.0  ;;  %v1062_v39 = vpop.permute.xlu0 %1061 }
  0xfc   : > { %v958_v49 = vrot.slane %v942_v44, %v2438_v28  ;;  %v962_v2 = vrot.slane %v943_v46, %v2438_v28  ;;  %v966_v50 = vrot.slane %v944_v47, %v2438_v28  ;;  %v970_v51 = vrot.slane %v945_v48, %v2438_v28 }
  0xfd   : > { %v1010_v53 = vrot.slane %v942_v44, %v2432_v26  ;;  %v1014_v55 = vrot.slane %v943_v46, %v2432_v26  ;;  %v1018_v54 = vrot.slane %v944_v47, %v2432_v26  ;;  %v1022_v56 = vrot.slane %v945_v48, %v2432_v26 }
  0xfe   : > { %v971_v24 = vmul.f32 %v958_v49, %v953_v43  ;;  %v972_v57 = vmul.f32 %v962_v2, %v953_v43  ;;  %v973_v58 = vmul.f32 %v966_v50, %v953_v43  ;;  %v974_v59 = vmul.f32 %v970_v51, %v953_v43 }
  0xff   : > { %v982_v61 = vrot.slane %v942_v44, %v2441_v29  ;;  %v986_v4 = vrot.slane %v943_v46, %v2441_v29  ;;  %v990_v62 = vrot.slane %v944_v47, %v2441_v29  ;;  %v994_v1 = vrot.slane %v945_v48, %v2441_v29 }
 0x100   : > { %v1038_v63 = vrot.slane %v942_v44, %v2445_v32  ;;  %v1042_v0 = vrot.slane %v943_v46, %v2445_v32  ;;  %v1046_v3 = vrot.slane %v944_v47, %v2445_v32  ;;  %v1050_v45 = vrot.slane %v945_v48, %v2445_v32 }
 0x101   : > { %v995_v6 = vmul.f32 %v982_v61, %v977_v60  ;;  %v996_v7 = vmul.f32 %v986_v4, %v977_v60  ;;  %v997_v8 = vmul.f32 %v990_v62, %v977_v60  ;;  %v998_v9 = vmul.f32 %v994_v1, %v977_v60 }
 0x102   : > { %v1023_v10 = vmul.f32 %v1010_v53, %v1005_v52  ;;  %v1024_v11 = vmul.f32 %v1014_v55, %v1005_v52  ;;  %v1025_v12 = vmul.f32 %v1018_v54, %v1005_v52  ;;  %v1026_v13 = vmul.f32 %v1022_v56, %v1005_v52 }
 0x103   : > { %v999_v14 = vadd.f32 %v995_v6, %v971_v24  ;;  %v1000_v15 = vadd.f32 %v996_v7, %v972_v57  ;;  %v1001_v16 = vadd.f32 %v997_v8, %v973_v58  ;;  %v1002_v18 = vadd.f32 %v998_v9, %v974_v59 }
 0x104   : > { %v1051_v19 = vmul.f32 %v1038_v63, %v1033_v5  ;;  %v1052_v21 = vmul.f32 %v1042_v0, %v1033_v5  ;;  %v1053_v23 = vmul.f32 %v1046_v3, %v1033_v5  ;;  %v1054_v22 = vmul.f32 %v1050_v45, %v1033_v5 }
 0x105   : > { %v1027_v30 = vadd.f32 %v1023_v10, %v999_v14  ;;  %v1028_v20 = vadd.f32 %v1024_v11, %v1000_v15  ;;  %v1029_v37 = vadd.f32 %v1025_v12, %v1001_v16  ;;  %v1030_v38 = vadd.f32 %v1026_v13, %v1002_v18 }
 0x106   : > { %v1120_v59 = vrot.slane %v2564_v25, 3  ;;  %v1121_v60 = vrot.slane %v2566_v31, 3  ;;  %v1122_v4 = vrot.slane %v2568_v36, 3  ;;  %v1123_v62 = vrot.slane %v2573_v40, 3 }
 0x107   : > { %v1055_v41 = vadd.f32 %v1051_v19, %v1027_v30  ;;  %v1056_v42 = vadd.f32 %v1052_v21, %v1028_v20  ;;  %v1057_v17 = vadd.f32 %v1053_v23, %v1029_v37  ;;  %v1058_v43 = vadd.f32 %v1054_v22, %v1030_v38 }
 0x108   : > { %v1151_v1 = vrot.slane %v2564_v25, 5  ;;  %v1152_v63 = vrot.slane %v2566_v31, 5  ;;  %v1153_v5 = vrot.slane %v2568_v36, 5  ;;  %v1154_v6 = vrot.slane %v2573_v40, 5 }
 0x109   : > { %v1064_v44 = vadd.f32 %v1062_v39, %v1055_v41  ;;  %v1065_v46 = vadd.f32 %v1062_v39, %v1056_v42  ;;  %v1066_v47 = vadd.f32 %v1062_v39, %v1057_v17  ;;  %v1067_v48 = vadd.f32 %v1062_v39, %v1058_v43  ;;  %v1194_v41 = vpop.permute.xlu1 %1193 }
 0x10a   : > { %v1167_v10 = vrot.slane %v2564_v25, 4  ;;  %v1168_v11 = vrot.slane %v2566_v31, 4  ;;  %v1170_v21 = vrot.slane %v2573_v40, 4 }
 0x10b   : > { %2196 = vtanh.f32 %v1064_v44  ;;  %v1092_v45 = vrot.slane %v1064_v44, 4  ;;  %v1093_v9 = vrot.slane %v1065_v46, 4  ;;  %v1094_v14 = vrot.slane %v1066_v47, 4 }
 0x10c   : > { %2198 = vtanh.f32 %v1065_v46  ;;  %v1095_v18 = vrot.slane %v1067_v48, 4 }
 0x10d   : > { %2200 = vtanh.f32 %v1066_v47 }
 0x10e   : > { %2202 = vtanh.f32 %v1067_v48 }
 0x115   : > { %v2197_v49 = vpop.eup %2196 }
 0x116   : > { %v2199_v2 = vpop.eup %2198  ;;  %v1072_v50 = vmul.f32 0.1, %v2197_v49 }
 0x117   : > { %v2201_v51 = vpop.eup %2200  ;;  %v1073_v52 = vmul.f32 0.1, %v2199_v2 }
 0x118   : > { %v2203_v53 = vpop.eup %2202  ;;  %v1074_v55 = vmul.f32 0.1, %v2201_v51  ;;  %v1076_v54 = vmul.f32 1.442695, %v1072_v50 }
 0x119   : > { %v1075_v56 = vmul.f32 0.1, %v2203_v53  ;;  %v1078_v24 = vmul.f32 1.442695, %v1073_v52 }
 0x11a   : > { %2204 = vpow2.f32 %v1076_v54  ;;  %v1080_v57 = vmul.f32 1.442695, %v1074_v55 }
 0x11b   : > { %2206 = vpow2.f32 %v1078_v24  ;;  %v1082_v58 = vmul.f32 1.442695, %v1075_v56 }
 0x11c   : > { %2208 = vpow2.f32 %v1080_v57 }
 0x11d   : > { %2210 = vpow2.f32 %v1082_v58 }
 0x124   : > { %v2205_v61 = vpop.eup %2204 }
 0x125   : > { %v2207_v0 = vpop.eup %2206  ;;  %v1084_v3 = vmul.f32 %v2205_v61, %v2435_v27  ;;  %v1169_v27 = vrot.slane %v2568_v36, 4 }
 0x126   : > { %v2209_v7 = vpop.eup %2208  ;;  %v1085_v8 = vmul.f32 %v2207_v0, %v2449_v33 }
 0x127   : > { %v2211_v12 = vpop.eup %2210  ;;  %v1086_v13 = vmul.f32 %v2209_v7, %v2452_v34  ;;  %v1100_v15 = vadd.f32 %v1092_v45, %v1084_v3 }
 0x128   : > { %v1087_v16 = vmul.f32 %v2211_v12, %v2455_v35  ;;  %v1101_v19 = vadd.f32 %v1093_v9, %v1085_v8 }
 0x129   : > { %v1102_v23 = vadd.f32 %v1094_v14, %v1086_v13  ;;  %v1108_v33 = vrot.slane %v1100_v15, 2  ;;  %v1128_v22 = vrot.slane %v1100_v15, 1  ;;  %v1159_v30 = vrot.slane %v1100_v15, 7 }
 0x12a   : > { %v1103_v20 = vadd.f32 %v1095_v18, %v1087_v16  ;;  %v1109_v37 = vrot.slane %v1101_v19, 2  ;;  %v1129_v38 = vrot.slane %v1101_v19, 1  ;;  %v1160_v39 = vrot.slane %v1101_v19, 7 }
 0x12b   : > { %v1110_v34 = vrot.slane %v1102_v23, 2  ;;  %v1130_v42 = vrot.slane %v1102_v23, 1  ;;  %v1137_v17 = vsel %vm1136_vm0, %v1108_v33, %v1120_v59  ;;  %v1161_v35 = vrot.slane %v1102_v23, 7  ;;  %v1246_v33 = vpop.permute.xlu0 %1245 }
 0x12c   : > { %v1111_v43 = vrot.slane %v1103_v20, 2  ;;  %v1131_v44 = vrot.slane %v1103_v20, 1  ;;  %v1138_v46 = vsel %vm1136_vm0, %v1109_v37, %v1121_v60  ;;  %v1142_v47 = vsel %vm1141_vm1, %v1137_v17, %v1128_v22 }
 0x12d   : > { %v1139_v48 = vsel %vm1136_vm0, %v1110_v34, %v1122_v4  ;;  %v1143_v49 = vsel %vm1141_vm1, %v1138_v46, %v1129_v38  ;;  %v1162_v2 = vrot.slane %v1103_v20, 7  ;;  %v1175_v50 = vsel %vm1136_vm0, %v1151_v1, %v1159_v30 }
 0x12e   : > { %v1140_v51 = vsel %vm1136_vm0, %v1111_v43, %v1123_v62  ;;  %v1144_v52 = vsel %vm1141_vm1, %v1139_v48, %v1130_v42  ;;  %v1176_v53 = vsel %vm1136_vm0, %v1152_v63, %v1160_v39  ;;  %v1177_v55 = vsel %vm1136_vm0, %v1153_v5, %v1161_v35  ;;  %v1218_v63 = vpop.permute.xlu1 %1217 }
 0x12f   : > { %v1145_v54 = vsel %vm1141_vm1, %v1140_v51, %v1131_v44  ;;  %v1178_v56 = vsel %vm1136_vm0, %v1154_v6, %v1162_v2  ;;  %v1179_v24 = vsel %vm1141_vm1, %v1175_v50, %v1159_v30  ;;  %v1180_v57 = vsel %vm1141_vm1, %v1176_v53, %v1160_v39 }
 0x130   : > { %v1181_v58 = vsel %vm1141_vm1, %v1177_v55, %v1161_v35  ;;  %v1182_v61 = vsel %vm1141_vm1, %v1178_v56, %v1162_v2  ;;  %v2663_v1 = vsel %vm1146_vm2, %v1179_v24, %v1167_v10  ;;  %v2666_v0 = vsel %vm1146_vm2, %v1180_v57, %v1168_v11 }
 0x131   : > { %v2669_v3 = vsel %vm1146_vm2, %v1181_v58, %v1169_v27  ;;  %v2672_v45 = vsel %vm1146_vm2, %v1182_v61, %v1170_v21  ;;  %v2677_v5 = vsel %vm1146_vm2, %v1142_v47, %v1120_v59  ;;  %v2682_v6 = vsel %vm1146_vm2, %v1143_v49, %v1121_v60 }
 0x132   : > { %v2687_v7 = vsel %vm1146_vm2, %v1144_v52, %v1122_v4  ;;  %v2692_v8 = vsel %vm1146_vm2, %v1145_v54, %v1123_v62  ;;  %v1199_v25 = vrot.slane %v2677_v5, %v2438_v28  ;;  %v1203_v59 = vrot.slane %v2682_v6, %v2438_v28  ;;  %v1274_v16 = vpop.permute.xlu1 %1273 }
 0x133   : > { %v1207_v31 = vrot.slane %v2687_v7, %v2438_v28  ;;  %v1211_v36 = vrot.slane %v2692_v8, %v2438_v28  ;;  %v1223_v60 = vrot.slane %v2677_v5, %v2441_v29  ;;  %v1227_v40 = vrot.slane %v2682_v6, %v2441_v29 }
 0x134   : > { %v1212_v4 = vmul.f32 %v1199_v25, %v1194_v41  ;;  %v1213_v62 = vmul.f32 %v1203_v59, %v1194_v41  ;;  %v1231_v9 = vrot.slane %v2687_v7, %v2441_v29  ;;  %v1235_v10 = vrot.slane %v2692_v8, %v2441_v29 }
 0x135   : > { %v1236_v11 = vmul.f32 %v1223_v60, %v1218_v63  ;;  %v1237_v12 = vmul.f32 %v1227_v40, %v1218_v63  ;;  %v1214_v13 = vmul.f32 %v1207_v31, %v1194_v41  ;;  %v1215_v14 = vmul.f32 %v1211_v36, %v1194_v41 }
 0x136   : > { %v1238_v15 = vmul.f32 %v1231_v9, %v1218_v63  ;;  %v1239_v27 = vmul.f32 %v1235_v10, %v1218_v63  ;;  %v1279_v21 = vrot.slane %v2677_v5, %v2445_v32  ;;  %v1283_v23 = vrot.slane %v2682_v6, %v2445_v32  ;;  %v1303_v44 = vpop.permute.xlu1 %1302 }
 0x137   : > { %v1240_v18 = vadd.f32 %v1236_v11, %v1212_v4  ;;  %v1241_v19 = vadd.f32 %v1237_v12, %v1213_v62  ;;  %v1287_v22 = vrot.slane %v2687_v7, %v2445_v32  ;;  %v1291_v30 = vrot.slane %v2692_v8, %v2445_v32  ;;  %v1320_v4 = vpop.permute.xlu0 %1319 }
 0x138   : > { %v1251_v20 = vrot.slane %v2677_v5, %v2432_v26  ;;  %v1255_v37 = vrot.slane %v2682_v6, %v2432_v26  ;;  %v1242_v38 = vadd.f32 %v1238_v15, %v1214_v13  ;;  %v1243_v39 = vadd.f32 %v1239_v27, %v1215_v14 }
 0x139   : > { %v1259_v41 = vrot.slane %v2687_v7, %v2432_v26  ;;  %v1263_v34 = vrot.slane %v2692_v8, %v2432_v26  ;;  %v1292_v46 = vmul.f32 %v1279_v21, %v1274_v16  ;;  %v1293_v47 = vmul.f32 %v1283_v23, %v1274_v16 }
 0x13a   : > { %v1264_v42 = vmul.f32 %v1251_v20, %v1246_v33  ;;  %v1265_v17 = vmul.f32 %v1255_v37, %v1246_v33  ;;  %v1294_v2 = vmul.f32 %v1287_v22, %v1274_v16  ;;  %v1295_v50 = vmul.f32 %v1291_v30, %v1274_v16  ;;  %v1344_v63 = vpop.permute.xlu1 %1343 }
 0x13b   : > { %v1266_v35 = vmul.f32 %v1259_v41, %v1246_v33  ;;  %v1267_v43 = vmul.f32 %v1263_v34, %v1246_v33 }
 0x13c   : > { %v1268_v48 = vadd.f32 %v1264_v42, %v1240_v18  ;;  %v1269_v49 = vadd.f32 %v1265_v17, %v1241_v19  ;;  %v1400_v42 = vpop.permute.xlu0 %1399 }
 0x13d   : > { %v1270_v51 = vadd.f32 %v1266_v35, %v1242_v38  ;;  %v1271_v52 = vadd.f32 %v1267_v43, %v1243_v39 }
 0x13e   : > { %v1296_v53 = vadd.f32 %v1292_v46, %v1268_v48  ;;  %v1297_v55 = vadd.f32 %v1293_v47, %v1269_v49  ;;  %v1372_v18 = vpop.permute.xlu1 %1371 }
 0x13f   : > { %v1298_v54 = vadd.f32 %v1294_v2, %v1270_v51  ;;  %v1299_v56 = vadd.f32 %v1295_v50, %v1271_v52 }
 0x140   : > { %v1305_v24 = vadd.f32 %v1303_v44, %v1296_v53  ;;  %v1306_v57 = vadd.f32 %v1303_v44, %v1297_v55 }
 0x141   : > { %v1307_v58 = vadd.f32 %v1303_v44, %v1298_v54  ;;  %v1308_v61 = vadd.f32 %v1303_v44, %v1299_v56 }
 0x142   : > { %v1309_v25 = vmax.f32 %v1305_v24, 0.0  ;;  %v1310_v59 = vmax.f32 %v1306_v57, 0.0  ;;  %v1429_v2 = vpop.permute.xlu1 %1428 }
 0x143   : > { %v1311_v31 = vmax.f32 %v1307_v58, 0.0  ;;  %v1312_v36 = vmax.f32 %v1308_v61, 0.0 }
 0x144   : > { %v1349_v60 = vrot.slane %v1309_v25, %v2441_v29  ;;  %v1353_v40 = vrot.slane %v1310_v59, %v2441_v29  ;;  %v1377_v10 = vrot.slane %v1309_v25, %v2432_v26  ;;  %v1381_v11 = vrot.slane %v1310_v59, %v2432_v26 }
 0x145   : > { %v1357_v62 = vrot.slane %v1311_v31, %v2441_v29  ;;  %v1361_v9 = vrot.slane %v1312_v36, %v2441_v29  ;;  %v1385_v12 = vrot.slane %v1311_v31, %v2432_v26  ;;  %v1389_v13 = vrot.slane %v1312_v36, %v2432_v26 }
 0x146   : > { %v1362_v14 = vmul.f32 %v1349_v60, %v1344_v63  ;;  %v1363_v15 = vmul.f32 %v1353_v40, %v1344_v63  ;;  %v1325_v19 = vrot.slane %v1309_v25, %v2438_v28  ;;  %v1329_v21 = vrot.slane %v1310_v59, %v2438_v28  ;;  %v1446_v60 = vpop.permute.xlu1 %1445 }
 0x147   : > { %v1364_v27 = vmul.f32 %v1357_v62, %v1344_v63  ;;  %v1365_v16 = vmul.f32 %v1361_v9, %v1344_v63  ;;  %v1333_v23 = vrot.slane %v1311_v31, %v2438_v28  ;;  %v1337_v33 = vrot.slane %v1312_v36, %v2438_v28 }
 0x148   : > { %v1405_v22 = vrot.slane %v1309_v25, %v2445_v32  ;;  %v1409_v30 = vrot.slane %v1310_v59, %v2445_v32  ;;  %v1413_v20 = vrot.slane %v1311_v31, %v2445_v32  ;;  %v1417_v37 = vrot.slane %v1312_v36, %v2445_v32 }
 0x149   : > { %v1338_v38 = vmul.f32 %v1325_v19, %v1320_v4  ;;  %v1339_v39 = vmul.f32 %v1329_v21, %v1320_v4  ;;  %v1340_v41 = vmul.f32 %v1333_v23, %v1320_v4  ;;  %v1341_v34 = vmul.f32 %v1337_v33, %v1320_v4 }
 0x14a   : > { %v1390_v17 = vmul.f32 %v1377_v10, %v1372_v18  ;;  %v1391_v35 = vmul.f32 %v1381_v11, %v1372_v18  ;;  %v1392_v43 = vmul.f32 %v1385_v12, %v1372_v18  ;;  %v1393_v44 = vmul.f32 %v1389_v13, %v1372_v18 }
 0x14b   : > { %v1366_v46 = vadd.f32 %v1362_v14, %v1338_v38  ;;  %v1367_v47 = vadd.f32 %v1363_v15, %v1339_v39  ;;  %v1368_v48 = vadd.f32 %v1364_v27, %v1340_v41  ;;  %v1369_v49 = vadd.f32 %v1365_v16, %v1341_v34  ;;  %v1498_v14 = vpop.permute.xlu1 %1497 }
 0x14c   : > { %v1418_v50 = vmul.f32 %v1405_v22, %v1400_v42  ;;  %v1419_v51 = vmul.f32 %v1409_v30, %v1400_v42  ;;  %v1420_v52 = vmul.f32 %v1413_v20, %v1400_v42  ;;  %v1421_v53 = vmul.f32 %v1417_v37, %v1400_v42  ;;  %v1470_v22 = vpop.permute.xlu0 %1469 }
 0x14d   : > { %v1394_v55 = vadd.f32 %v1390_v17, %v1366_v46  ;;  %v1395_v54 = vadd.f32 %v1391_v35, %v1367_v47  ;;  %v1396_v56 = vadd.f32 %v1392_v43, %v1368_v48  ;;  %v1397_v24 = vadd.f32 %v1393_v44, %v1369_v49 }
 0x14f   : > { %v1422_v57 = vadd.f32 %v1418_v50, %v1394_v55  ;;  %v1423_v58 = vadd.f32 %v1419_v51, %v1395_v54  ;;  %v1424_v61 = vadd.f32 %v1420_v52, %v1396_v56  ;;  %v1425_v63 = vadd.f32 %v1421_v53, %v1397_v24  ;;  %v1526_v17 = vpop.permute.xlu1 %1525 }
 0x151   : > { %v1431_v25 = vadd.f32 %v1429_v2, %v1422_v57  ;;  %v1432_v59 = vadd.f32 %v1429_v2, %v1423_v58  ;;  %v1433_v31 = vadd.f32 %v1429_v2, %v1424_v61  ;;  %v1434_v36 = vadd.f32 %v1429_v2, %v1425_v63 }
 0x153   : > { %v1435_v40 = vmax.f32 %v1431_v25, 0.0  ;;  %v1436_v4 = vmax.f32 %v1432_v59, 0.0  ;;  %v1437_v62 = vmax.f32 %v1433_v31, 0.0  ;;  %v1438_v9 = vmax.f32 %v1434_v36, 0.0  ;;  %v1555_v25 = vpop.permute.xlu0 %1554 }
 0x155   : > { %v1451_v10 = vrot.slane %v1435_v40, %v2438_v28  ;;  %v1455_v11 = vrot.slane %v1436_v4, %v2438_v28  ;;  %v1459_v12 = vrot.slane %v1437_v62, %v2438_v28  ;;  %v1463_v13 = vrot.slane %v1438_v9, %v2438_v28 }
 0x156   : > { %v1503_v15 = vrot.slane %v1435_v40, %v2432_v26  ;;  %v1507_v27 = vrot.slane %v1436_v4, %v2432_v26  ;;  %v1511_v16 = vrot.slane %v1437_v62, %v2432_v26  ;;  %v1515_v18 = vrot.slane %v1438_v9, %v2432_v26 }
 0x157   : > { %v1464_v19 = vmul.f32 %v1451_v10, %v1446_v60  ;;  %v1465_v21 = vmul.f32 %v1455_v11, %v1446_v60  ;;  %v1466_v23 = vmul.f32 %v1459_v12, %v1446_v60  ;;  %v1467_v33 = vmul.f32 %v1463_v13, %v1446_v60 }
 0x158   : > { %v1475_v30 = vrot.slane %v1435_v40, %v2441_v29  ;;  %v1479_v20 = vrot.slane %v1436_v4, %v2441_v29  ;;  %v1483_v37 = vrot.slane %v1437_v62, %v2441_v29  ;;  %v1487_v38 = vrot.slane %v1438_v9, %v2441_v29 }
 0x159   : > { %v1531_v39 = vrot.slane %v1435_v40, %v2445_v32  ;;  %v1535_v41 = vrot.slane %v1436_v4, %v2445_v32  ;;  %v1539_v34 = vrot.slane %v1437_v62, %v2445_v32  ;;  %v1543_v42 = vrot.slane %v1438_v9, %v2445_v32 }
 0x15a   : > { %v1488_v35 = vmul.f32 %v1475_v30, %v1470_v22  ;;  %v1489_v43 = vmul.f32 %v1479_v20, %v1470_v22  ;;  %v1490_v44 = vmul.f32 %v1483_v37, %v1470_v22  ;;  %v1491_v46 = vmul.f32 %v1487_v38, %v1470_v22 }
 0x15b   : > { %v1516_v47 = vmul.f32 %v1503_v15, %v1498_v14  ;;  %v1517_v48 = vmul.f32 %v1507_v27, %v1498_v14  ;;  %v1518_v49 = vmul.f32 %v1511_v16, %v1498_v14  ;;  %v1519_v2 = vmul.f32 %v1515_v18, %v1498_v14 }
 0x15c   : > { %v1492_v50 = vadd.f32 %v1488_v35, %v1464_v19  ;;  %v1493_v51 = vadd.f32 %v1489_v43, %v1465_v21  ;;  %v1494_v52 = vadd.f32 %v1490_v44, %v1466_v23  ;;  %v1495_v53 = vadd.f32 %v1491_v46, %v1467_v33  ;;  %v1604_v33 = vpop.permute.xlu1 %1603 }
 0x15d   : > { %v1544_v55 = vmul.f32 %v1531_v39, %v1526_v17  ;;  %v1545_v54 = vmul.f32 %v1535_v41, %v1526_v17  ;;  %v1546_v56 = vmul.f32 %v1539_v34, %v1526_v17  ;;  %v1547_v24 = vmul.f32 %v1543_v42, %v1526_v17 }
 0x15e   : > { %v1520_v57 = vadd.f32 %v1516_v47, %v1492_v50  ;;  %v1521_v58 = vadd.f32 %v1517_v48, %v1493_v51  ;;  %v1522_v61 = vadd.f32 %v1518_v49, %v1494_v52  ;;  %v1523_v63 = vadd.f32 %v1519_v2, %v1495_v53 }
 0x160   : > { %v1548_v59 = vadd.f32 %v1544_v55, %v1520_v57  ;;  %v1549_v31 = vadd.f32 %v1545_v54, %v1521_v58  ;;  %v1550_v36 = vadd.f32 %v1546_v56, %v1522_v61  ;;  %v1551_v60 = vadd.f32 %v1547_v24, %v1523_v63  ;;  %v1628_v46 = vpop.permute.xlu1 %1627 }
 0x162   : > { %v1557_v40 = vadd.f32 %v1555_v25, %v1548_v59  ;;  %v1558_v4 = vadd.f32 %v1555_v25, %v1549_v31  ;;  %v1559_v62 = vadd.f32 %v1555_v25, %v1550_v36  ;;  %v1560_v9 = vadd.f32 %v1555_v25, %v1551_v60 }
 0x164   : > { %2212 = vtanh.f32 %v1557_v40  ;;  %v1585_v37 = vrot.slane %v1557_v40, 4  ;;  %v1586_v41 = vrot.slane %v1558_v4, 4  ;;  %v1587_v17 = vrot.slane %v1559_v62, 4  ;;  %v1684_v36 = vpop.permute.xlu1 %1683 }
 0x165   : > { %2214 = vtanh.f32 %v1558_v4 }
 0x166   : > { %2216 = vtanh.f32 %v1559_v62 }
 0x167   : > { %2218 = vtanh.f32 %v1560_v9 }
 0x16e   : > { %v2213_v10 = vpop.eup %2212 }
 0x16f   : > { %v2215_v11 = vpop.eup %2214  ;;  %v1565_v12 = vmul.f32 0.1, %v2213_v10  ;;  %v1656_v10 = vpop.permute.xlu0 %1655 }
 0x170   : > { %v2217_v13 = vpop.eup %2216  ;;  %v1566_v14 = vmul.f32 0.1, %v2215_v11 }
 0x171   : > { %v2219_v15 = vpop.eup %2218  ;;  %v1567_v27 = vmul.f32 0.1, %v2217_v13  ;;  %v1569_v16 = vmul.f32 1.442695, %v1565_v12 }
 0x172   : > { %v1568_v18 = vmul.f32 0.1, %v2219_v15  ;;  %v1571_v19 = vmul.f32 1.442695, %v1566_v14 }
 0x173   : > { %2220 = vpow2.f32 %v1569_v16  ;;  %v1573_v21 = vmul.f32 1.442695, %v1567_v27 }
 0x174   : > { %2222 = vpow2.f32 %v1571_v19  ;;  %v1575_v23 = vmul.f32 1.442695, %v1568_v18 }
 0x175   : > { %2224 = vpow2.f32 %v1573_v21 }
 0x176   : > { %2226 = vpow2.f32 %v1575_v23 }
 0x17d   : > { %v2221_v22 = vpop.eup %2220 }
 0x17e   : > { %v2223_v30 = vpop.eup %2222  ;;  %v1577_v20 = vmul.f32 %v2221_v22, %v2663_v1  ;;  %v1588_v1 = vrot.slane %v1560_v9, 4 }
 0x17f   : > { %v2225_v38 = vpop.eup %2224  ;;  %v1578_v39 = vmul.f32 %v2223_v30, %v2666_v0  ;;  %v1713_v30 = vpop.permute.xlu1 %1712 }
 0x180   : > { %v2227_v34 = vpop.eup %2226  ;;  %v1579_v42 = vmul.f32 %v2225_v38, %v2669_v3  ;;  %v1593_v35 = vadd.f32 %v1585_v37, %v1577_v20 }
 0x181   : > { %v1580_v43 = vmul.f32 %v2227_v34, %v2672_v45  ;;  %v1594_v44 = vadd.f32 %v1586_v41, %v1578_v39 }
 0x182   : > { %v1595_v0 = vadd.f32 %v1587_v17, %v1579_v42  ;;  %v2015_v47 = vrot.slane %v1593_v35, 4  ;;  %v1609_v48 = vrot.slane %v1593_v35, %v2438_v28  ;;  %v1633_v3 = vrot.slane %v1593_v35, %v2441_v29 }
 0x183   : > { %v1596_v49 = vadd.f32 %v1588_v1, %v1580_v43  ;;  %v2016_v2 = vrot.slane %v1594_v44, 4  ;;  %v1613_v50 = vrot.slane %v1594_v44, %v2438_v28  ;;  %v1637_v51 = vrot.slane %v1594_v44, %v2441_v29 }
 0x184   : > { %v2017_v52 = vrot.slane %v1595_v0, 4  ;;  %2023 = vst [vmem:[%s2766_s15] sm:$0xf0] %v2015_v47  ;;  %v1617_v45 = vrot.slane %v1595_v0, %v2438_v28  ;;  %v1622_v53 = vmul.f32 %v1609_v48, %v1604_v33  ;;  %v1641_v55 = vrot.slane %v1595_v0, %v2441_v29  ;;  %v1754_v47 = vpop.permute.xlu1 %1753 }
 0x185   : > { %v2018_v54 = vrot.slane %v1596_v49, 4  ;;  %2024 = vst [vmem:[%s2766_s15 + $0x8] sm:$0xf0] %v2016_v2  ;;  %v1621_v56 = vrot.slane %v1596_v49, %v2438_v28  ;;  %v1623_v24 = vmul.f32 %v1613_v50, %v1604_v33  ;;  %v1645_v57 = vrot.slane %v1596_v49, %v2441_v29 }
 0x186   : > { %2025 = vst [vmem:[%s2766_s15 + $0x10] sm:$0xf0] %v2017_v52  ;;  %v1624_v58 = vmul.f32 %v1617_v45, %v1604_v33  ;;  %v1646_v61 = vmul.f32 %v1633_v3, %v1628_v46  ;;  %v1647_v63 = vmul.f32 %v1637_v51, %v1628_v46  ;;  %v1648_v25 = vmul.f32 %v1641_v55, %v1628_v46  ;;  %v1730_v45 = vpop.permute.xlu0 %1729 }
 0x187   : > { %2026 = vst [vmem:[%s2766_s15 + $0x18] sm:$0xf0] %v2018_v54  ;;  %v1625_v59 = vmul.f32 %v1621_v56, %v1604_v33  ;;  %v1649_v31 = vmul.f32 %v1645_v57, %v1628_v46  ;;  %v1689_v60 = vrot.slane %v1593_v35, %v2445_v32  ;;  %v1693_v9 = vrot.slane %v1594_v44, %v2445_v32 }
 0x188   : > { %v1650_v40 = vadd.f32 %v1646_v61, %v1622_v53  ;;  %v1651_v4 = vadd.f32 %v1647_v63, %v1623_v24  ;;  %v1652_v62 = vadd.f32 %v1648_v25, %v1624_v58  ;;  %v1697_v11 = vrot.slane %v1595_v0, %v2445_v32  ;;  %v1782_v25 = vpop.permute.xlu1 %1781 }
 0x189   : > { %v1661_v12 = vrot.slane %v1593_v35, %v2432_v26  ;;  %v1665_v13 = vrot.slane %v1594_v44, %v2432_v26  ;;  %v1669_v14 = vrot.slane %v1595_v0, %v2432_v26  ;;  %v1653_v15 = vadd.f32 %v1649_v31, %v1625_v59 }
 0x18a   : > { %v1701_v27 = vrot.slane %v1596_v49, %v2445_v32  ;;  %v1673_v16 = vrot.slane %v1596_v49, %v2432_v26  ;;  %v1702_v23 = vmul.f32 %v1689_v60, %v1684_v36  ;;  %v1703_v33 = vmul.f32 %v1693_v9, %v1684_v36 }
 0x18b   : > { %v1674_v18 = vmul.f32 %v1661_v12, %v1656_v10  ;;  %v1675_v19 = vmul.f32 %v1665_v13, %v1656_v10  ;;  %v1676_v21 = vmul.f32 %v1669_v14, %v1656_v10  ;;  %v1704_v20 = vmul.f32 %v1697_v11, %v1684_v36  ;;  %v1810_v14 = vpop.permute.xlu0 %1809 }
 0x18c   : > { %v1677_v22 = vmul.f32 %v1673_v16, %v1656_v10  ;;  %v1705_v41 = vmul.f32 %v1701_v27, %v1684_v36 }
 0x18d   : > { %v1678_v37 = vadd.f32 %v1674_v18, %v1650_v40  ;;  %v1679_v38 = vadd.f32 %v1675_v19, %v1651_v4  ;;  %v1680_v39 = vadd.f32 %v1676_v21, %v1652_v62 }
 0x18e   : > { %v1681_v34 = vadd.f32 %v1677_v22, %v1653_v15  ;;  %v1839_v22 = vpop.permute.xlu1 %1838 }
 0x18f   : > { %v1706_v42 = vadd.f32 %v1702_v23, %v1678_v37  ;;  %v1707_v17 = vadd.f32 %v1703_v33, %v1679_v38  ;;  %v1708_v35 = vadd.f32 %v1704_v20, %v1680_v39 }
 0x190   : > { %v1709_v43 = vadd.f32 %v1705_v41, %v1681_v34 }
 0x191   : > { %v1715_v1 = vadd.f32 %v1713_v30, %v1706_v42  ;;  %v1716_v44 = vadd.f32 %v1713_v30, %v1707_v17  ;;  %v1717_v46 = vadd.f32 %v1713_v30, %v1708_v35 }
 0x192   : > { %v1718_v0 = vadd.f32 %v1713_v30, %v1709_v43 }
 0x193   : > { %v1719_v48 = vmax.f32 %v1715_v1, 0.0  ;;  %v1720_v3 = vmax.f32 %v1716_v44, 0.0  ;;  %v1721_v49 = vmax.f32 %v1717_v46, 0.0 }
 0x194   : > { %v1722_v2 = vmax.f32 %v1718_v0, 0.0 }
 0x195   : > { %v1759_v50 = vrot.slane %v1719_v48, %v2441_v29  ;;  %v1763_v51 = vrot.slane %v1720_v3, %v2441_v29  ;;  %v1767_v52 = vrot.slane %v1721_v49, %v2441_v29  ;;  %v1787_v55 = vrot.slane %v1719_v48, %v2432_v26 }
 0x196   : > { %v1771_v53 = vrot.slane %v1722_v2, %v2441_v29  ;;  %v1791_v54 = vrot.slane %v1720_v3, %v2432_v26  ;;  %v1795_v56 = vrot.slane %v1721_v49, %v2432_v26  ;;  %v1799_v24 = vrot.slane %v1722_v2, %v2432_v26 }
 0x197   : > { %v1772_v57 = vmul.f32 %v1759_v50, %v1754_v47  ;;  %v1773_v58 = vmul.f32 %v1763_v51, %v1754_v47  ;;  %v1774_v61 = vmul.f32 %v1767_v52, %v1754_v47  ;;  %v1735_v59 = vrot.slane %v1719_v48, %v2438_v28 }
 0x198   : > { %v1775_v63 = vmul.f32 %v1771_v53, %v1754_v47  ;;  %v1739_v31 = vrot.slane %v1720_v3, %v2438_v28  ;;  %v1743_v36 = vrot.slane %v1721_v49, %v2438_v28  ;;  %v1747_v60 = vrot.slane %v1722_v2, %v2438_v28 }
 0x199   : > { %v1815_v40 = vrot.slane %v1719_v48, %v2445_v32  ;;  %v1819_v4 = vrot.slane %v1720_v3, %v2445_v32  ;;  %v1823_v62 = vrot.slane %v1721_v49, %v2445_v32  ;;  %v1827_v9 = vrot.slane %v1722_v2, %v2445_v32  ;;  %v1856_v48 = vpop.permute.xlu1 %1855 }
 0x19a   : > { %v1748_v10 = vmul.f32 %v1735_v59, %v1730_v45  ;;  %v1749_v11 = vmul.f32 %v1739_v31, %v1730_v45  ;;  %v1750_v12 = vmul.f32 %v1743_v36, %v1730_v45  ;;  %v1751_v13 = vmul.f32 %v1747_v60, %v1730_v45  ;;  %v1880_v59 = vpop.permute.xlu0 %1879 }
 0x19b   : > { %v1800_v15 = vmul.f32 %v1787_v55, %v1782_v25  ;;  %v1801_v27 = vmul.f32 %v1791_v54, %v1782_v25  ;;  %v1802_v16 = vmul.f32 %v1795_v56, %v1782_v25  ;;  %v1803_v18 = vmul.f32 %v1799_v24, %v1782_v25 }
 0x19c   : > { %v1776_v19 = vadd.f32 %v1772_v57, %v1748_v10  ;;  %v1777_v21 = vadd.f32 %v1773_v58, %v1749_v11  ;;  %v1778_v23 = vadd.f32 %v1774_v61, %v1750_v12  ;;  %v1779_v33 = vadd.f32 %v1775_v63, %v1751_v13 }
 0x19d   : > { %v1828_v30 = vmul.f32 %v1815_v40, %v1810_v14  ;;  %v1829_v20 = vmul.f32 %v1819_v4, %v1810_v14  ;;  %v1830_v37 = vmul.f32 %v1823_v62, %v1810_v14  ;;  %v1831_v38 = vmul.f32 %v1827_v9, %v1810_v14  ;;  %v1908_v55 = vpop.permute.xlu1 %1907 }
 0x19e   : > { %v1804_v39 = vadd.f32 %v1800_v15, %v1776_v19  ;;  %v1805_v41 = vadd.f32 %v1801_v27, %v1777_v21  ;;  %v1806_v34 = vadd.f32 %v1802_v16, %v1778_v23  ;;  %v1807_v42 = vadd.f32 %v1803_v18, %v1779_v33 }
 0x1a0   : > { %v1832_v17 = vadd.f32 %v1828_v30, %v1804_v39  ;;  %v1833_v35 = vadd.f32 %v1829_v20, %v1805_v41  ;;  %v1834_v43 = vadd.f32 %v1830_v37, %v1806_v34  ;;  %v1835_v1 = vadd.f32 %v1831_v38, %v1807_v42  ;;  %v1965_v39 = vpop.permute.xlu0 %1964 }
 0x1a1   : > { %v1936_v9 = vpop.permute.xlu1 %1935 }
 0x1a2   : > { %v1841_v44 = vadd.f32 %v1839_v22, %v1832_v17  ;;  %v1842_v46 = vadd.f32 %v1839_v22, %v1833_v35  ;;  %v1843_v0 = vadd.f32 %v1839_v22, %v1834_v43  ;;  %v1844_v47 = vadd.f32 %v1839_v22, %v1835_v1 }
 0x1a4   : > { %v1845_v3 = vmax.f32 %v1841_v44, 0.0  ;;  %v1846_v49 = vmax.f32 %v1842_v46, 0.0  ;;  %v1847_v2 = vmax.f32 %v1843_v0, 0.0  ;;  %v1848_v50 = vmax.f32 %v1844_v47, 0.0 }
 0x1a6   : > { %v1861_v51 = vrot.slane %v1845_v3, %v2438_v28  ;;  %v1865_v52 = vrot.slane %v1846_v49, %v2438_v28  ;;  %v1869_v45 = vrot.slane %v1847_v2, %v2438_v28  ;;  %v1873_v53 = vrot.slane %v1848_v50, %v2438_v28 }
 0x1a7   : > { %v1913_v54 = vrot.slane %v1845_v3, %v2432_v26  ;;  %v1917_v56 = vrot.slane %v1846_v49, %v2432_v26  ;;  %v1921_v24 = vrot.slane %v1847_v2, %v2432_v26  ;;  %v1925_v57 = vrot.slane %v1848_v50, %v2432_v26 }
 0x1a8   : > { %v1874_v58 = vmul.f32 %v1861_v51, %v1856_v48  ;;  %v1875_v61 = vmul.f32 %v1865_v52, %v1856_v48  ;;  %v1876_v63 = vmul.f32 %v1869_v45, %v1856_v48  ;;  %v1877_v25 = vmul.f32 %v1873_v53, %v1856_v48 }
 0x1a9   : > { %v1885_v31 = vrot.slane %v1845_v3, %v2441_v29  ;;  %v1889_v36 = vrot.slane %v1846_v49, %v2441_v29  ;;  %v1893_v28 = vrot.slane %v1847_v2, %v2441_v29  ;;  %v1897_v60 = vrot.slane %v1848_v50, %v2441_v29 }
 0x1aa   : > { %v1941_v40 = vrot.slane %v1845_v3, %v2445_v32  ;;  %v1945_v4 = vrot.slane %v1846_v49, %v2445_v32  ;;  %v1949_v62 = vrot.slane %v1847_v2, %v2445_v32  ;;  %v1953_v26 = vrot.slane %v1848_v50, %v2445_v32 }
 0x1ab   : > { %v1898_v10 = vmul.f32 %v1885_v31, %v1880_v59  ;;  %v1899_v11 = vmul.f32 %v1889_v36, %v1880_v59  ;;  %v1900_v12 = vmul.f32 %v1893_v28, %v1880_v59  ;;  %v1901_v13 = vmul.f32 %v1897_v60, %v1880_v59 }
 0x1ac   : > { %v1926_v14 = vmul.f32 %v1913_v54, %v1908_v55  ;;  %v1927_v15 = vmul.f32 %v1917_v56, %v1908_v55  ;;  %v1928_v27 = vmul.f32 %v1921_v24, %v1908_v55  ;;  %v1929_v16 = vmul.f32 %v1925_v57, %v1908_v55 }
 0x1ad   : > { %v1902_v18 = vadd.f32 %v1898_v10, %v1874_v58  ;;  %v1903_v19 = vadd.f32 %v1899_v11, %v1875_v61  ;;  %v1904_v29 = vadd.f32 %v1900_v12, %v1876_v63  ;;  %v1905_v21 = vadd.f32 %v1901_v13, %v1877_v25 }
 0x1ae   : > { %v1954_v23 = vmul.f32 %v1941_v40, %v1936_v9  ;;  %v1955_v33 = vmul.f32 %v1945_v4, %v1936_v9  ;;  %v1956_v22 = vmul.f32 %v1949_v62, %v1936_v9  ;;  %v1957_v30 = vmul.f32 %v1953_v26, %v1936_v9 }
 0x1af   : > { %v1930_v20 = vadd.f32 %v1926_v14, %v1902_v18  ;;  %v1931_v37 = vadd.f32 %v1927_v15, %v1903_v19  ;;  %v1932_v32 = vadd.f32 %v1928_v27, %v1904_v29  ;;  %v1933_v38 = vadd.f32 %v1929_v16, %v1905_v21 }
 0x1b1   : > { %v1958_v41 = vadd.f32 %v1954_v23, %v1930_v20  ;;  %v1959_v34 = vadd.f32 %v1955_v33, %v1931_v37  ;;  %v1960_v42 = vadd.f32 %v1956_v22, %v1932_v32  ;;  %v1961_v17 = vadd.f32 %v1957_v30, %v1933_v38 }
 0x1b3   : > { %v1967_v35 = vadd.f32 %v1965_v39, %v1958_v41  ;;  %v1968_v43 = vadd.f32 %v1965_v39, %v1959_v34  ;;  %v1969_v1 = vadd.f32 %v1965_v39, %v1960_v42  ;;  %v1970_v44 = vadd.f32 %v1965_v39, %v1961_v17 }
 0x1b5   : > { %2228 = vtanh.f32 %v1967_v35  ;;  %v1995_v24 = vrot.slane %v1967_v35, 4  ;;  %v1996_v61 = vrot.slane %v1968_v43, 4  ;;  %v1997_v59 = vrot.slane %v1969_v1, 4 }
 0x1b6   : > { %2230 = vtanh.f32 %v1968_v43  ;;  %v1998_v28 = vrot.slane %v1970_v44, 4 }
 0x1b7   : > { %2232 = vtanh.f32 %v1969_v1 }
 0x1b8   : > { %2234 = vtanh.f32 %v1970_v44 }
 0x1bf   : > { %v2229_v46 = vpop.eup %2228 }
 0x1c0   : > { %v2231_v0 = vpop.eup %2230  ;;  %v1975_v47 = vmul.f32 0.1, %v2229_v46 }
 0x1c1   : > { %v2233_v48 = vpop.eup %2232  ;;  %v1976_v3 = vmul.f32 0.1, %v2231_v0 }
 0x1c2   : > { %v2235_v49 = vpop.eup %2234  ;;  %v1977_v2 = vmul.f32 0.1, %v2233_v48  ;;  %v1979_v50 = vmul.f32 1.442695, %v1975_v47 }
 0x1c3   : > { %v1978_v51 = vmul.f32 0.1, %v2235_v49  ;;  %v1981_v52 = vmul.f32 1.442695, %v1976_v3 }
 0x1c4   : > { %2236 = vpow2.f32 %v1979_v50  ;;  %v1983_v45 = vmul.f32 1.442695, %v1977_v2 }
 0x1c5   : > { %2238 = vpow2.f32 %v1981_v52  ;;  %v1985_v53 = vmul.f32 1.442695, %v1978_v51 }
 0x1c6   : > { %2240 = vpow2.f32 %v1983_v45 }
 0x1c7   : > { %2242 = vpow2.f32 %v1985_v53 }
 0x1ce   : > { %v2237_v55 = vpop.eup %2236 }
 0x1cf   : > { %v2239_v54 = vpop.eup %2238  ;;  %v1987_v56 = vmul.f32 %v2237_v55, %v2677_v5 }
 0x1d0   : > { %v2241_v57 = vpop.eup %2240  ;;  %v1988_v58 = vmul.f32 %v2239_v54, %v2682_v6 }
 0x1d1   : > { %v2243_v63 = vpop.eup %2242  ;;  %v1989_v25 = vmul.f32 %v2241_v57, %v2687_v7  ;;  %v2003_v31 = vadd.f32 %v1995_v24, %v1987_v56 }
 0x1d2   : > { %v1990_v36 = vmul.f32 %v2243_v63, %v2692_v8  ;;  %v2004_v60 = vadd.f32 %v1996_v61, %v1988_v58 }
 0x1d3   : > { %v2005_v40 = vadd.f32 %v1997_v59, %v1989_v25  ;;  %2007 = vst [vmem:[%s2766_s15] sm:$0xf] %v2003_v31 }
 0x1d4   : > { %v2006_v4 = vadd.f32 %v1998_v28, %v1990_v36  ;;  %2008 = vst [vmem:[%s2766_s15 + $0x8] sm:$0xf] %v2004_v60 }
 0x1d5   : > { %2009 = vst [vmem:[%s2766_s15 + $0x10] sm:$0xf] %v2005_v40 }
 0x1d6   : > { %2010 = vst [vmem:[%s2766_s15 + $0x18] sm:$0xf] %v2006_v4 }
 0x1d7 PF: > { %s17_s24 = sadd.s32 1, %s2250_s24  }
 0x1d8   : > { %p14_p4 = scmp.ge.s32.totalorder %s17_s24, 4  }
 0x1da   :  { %16 = sbr.rel (!%p14_p4) target bundleno = 1 (0x1), region = 96 }

</bundles_post_ra>
